<compile_context>
chip_gen: v5e
topology: v5e:2x2
jax: 0.10.0
libtpu: 0.0.40
codegen_flags: <defaults>
</compile_context>

<pallas_src>
import jax
import jax.numpy as jnp
from jax import lax
from jax.experimental import pallas as pl
from jax.experimental.pallas import tpu as pltpu

# ----------------------------- small synthetic config ------------------------
B, S = 2, 8            # batch, sequence length
H = 32                 # hidden size
NH = 4                 # attention heads
HD = H // NH           # head dim
FF = 64                # intermediate (FFN) size
L = 2                  # number of encoder layers
VOCAB = 64             # vocab size
MAX_POS = 40           # max position embeddings
PAD_ID = 1             # config.pad_token_id (Roberta default)
EPS = 1e-5             # layer-norm eps
NEG = -1e9             # additive mask value for masked positions


def _layernorm(x, g, b):
    mu = jnp.mean(x, axis=-1, keepdims=True)
    var = jnp.mean((x - mu) ** 2, axis=-1, keepdims=True)
    return (x - mu) * lax.rsqrt(var + EPS) * g + b


# ------------------------------- fused Pallas kernel -------------------------
def fused_forward_kernel(
        emb_ref, mrow_ref, mcol_ref, eg_ref, eb_ref,
        wqkv_ref, bqkv_ref, wo_ref, w1_ref, bb1_ref, w2_ref, pvec_ref,
        tok_ref, pool_ref, x_scr, amask_scr):
    layer = pl.program_id(1)

    # ---- per-sequence init: embedding LayerNorm + additive pad mask ---------
    @pl.when(layer == 0)
    def _():
        x_scr[...] = _layernorm(emb_ref[0], eg_ref[...], eb_ref[...])
        # valid iff both query and key positions are non-pad (same sequence by
        # construction -- batch is a grid axis, so no cross-batch terms exist).
        amask_scr[...] = (1.0 - mrow_ref[0] * mcol_ref[0]) * NEG     # (S, S)

    x = x_scr[...]                # (S, H) f32 current layer input
    amask = amask_scr[...]        # (S, S) f32

    # small packed per-layer vectors: [bo, g1, b1, bb2, g2, b2]
    pv = pvec_ref[0]              # (6, H) f32
    bo = pv[0:1, :]
    g1 = pv[1:2, :]
    b1 = pv[2:3, :]
    bb2 = pv[3:4, :]
    g2 = pv[4:5, :]
    b2 = pv[5:6, :]

    # ---- self-attention: fused QKV projection (1/sqrt(HD) folded into Wq/bq) -
    xb = x.astype(jnp.bfloat16)
    qkv = jnp.dot(xb, wqkv_ref[0],
                  preferred_element_type=jnp.float32) + bqkv_ref[0]   # (S, 3H)
    qkv_b = qkv.astype(jnp.bfloat16)                                  # one cast

    wo = wo_ref[0]                                                    # (H, H) bf16
    attn = jnp.zeros((S, H), jnp.float32)
    for h in range(NH):                        # static unroll, NH=4
        # TODO(synk): at production H the q/k/v split offsets are 128-aligned;
        # per-head HD=64 slices still cost a small relayout -- move heads to a
        # leading dim (or grid axis) when implementing the flash-tiled version.
        q_h = qkv_b[:, h * HD:(h + 1) * HD]
        k_h = qkv_b[:, H + h * HD:H + (h + 1) * HD]
        v_h = qkv_b[:, 2 * H + h * HD:2 * H + (h + 1) * HD]
        # scores_h = q_h @ k_h^T (contract dim 1 of both; no transpose op)
        s = lax.dot_general(q_h, k_h,
                            dimension_numbers=(((1,), (1,)), ((), ())),
                            preferred_element_type=jnp.float32) + amask
        s = s - jnp.max(s, axis=-1, keepdims=True)
        p = jnp.exp(s)
        p = p * pl.reciprocal(jnp.sum(p, axis=-1, keepdims=True), approx=True)
        ctx_h = jnp.dot(p.astype(jnp.bfloat16), v_h,
                        preferred_element_type=jnp.float32)           # (S, HD)
        # accumulate output projection instead of concatenating heads
        attn = attn + jnp.dot(ctx_h.astype(jnp.bfloat16), wo[h * HD:(h + 1) * HD, :],
                              preferred_element_type=jnp.float32)
    attn = attn + bo

    y = _layernorm(attn + x, g1, b1)

    # ---- feed-forward --------------------------------------------------------
    # TODO(synk): HF Roberta uses exact erf-GELU; tanh-approx used for Mosaic-
    # safe lowering (negligible numeric difference).
    hmid = jax.nn.gelu(
        jnp.dot(y.astype(jnp.bfloat16), w1_ref[0],
                preferred_element_type=jnp.float32) + bb1_ref[0],
        approximate=True)
    ffo = jnp.dot(hmid.astype(jnp.bfloat16), w2_ref[0],
                  preferred_element_type=jnp.float32) + bb2
    xn = _layernorm(ffo + y, g2, b2)
    x_scr[...] = xn

    # ---- last layer: emit token embeddings + masked mean pooling -------------
    @pl.when(layer == pl.num_programs(1) - 1)
    def _():
        tok_ref[0] = xn
        m = mrow_ref[0]                                        # (S, 1)
        num = jnp.sum(xn * m, axis=0, keepdims=True)           # (1, H)
        den = jnp.maximum(jnp.sum(m, axis=0, keepdims=True), 1.0)   # (1, 1)
        pool_ref[0] = num / den        # clamp: no NaN on an all-pad sequence


# ------------------------------- kernel wrapper -------------------------------
def run_fused(emb, m_row, m_col, emb_ln_g, emb_ln_b, w):
    layer_map = lambda b, l: (l, 0, 0)
    batch_map = lambda b, l: (b, 0, 0)
    const_map = lambda b, l: (0, 0)

    in_specs = [
        pl.BlockSpec((1, S, H), batch_map),        # embeddings
        pl.BlockSpec((1, S, 1), batch_map),        # mask rows
        pl.BlockSpec((1, 1, S), batch_map),        # mask cols
        pl.BlockSpec((1, H), const_map),           # emb LN gamma
        pl.BlockSpec((1, H), const_map),           # emb LN beta
        pl.BlockSpec((1, H, 3 * H), layer_map),    # Wqkv
        pl.BlockSpec((1, 1, 3 * H), layer_map),    # bqkv
        pl.BlockSpec((1, H, H), layer_map),        # Wo
        pl.BlockSpec((1, H, FF), layer_map),       # W1
        pl.BlockSpec((1, 1, FF), layer_map),       # b1 (FFN)
        pl.BlockSpec((1, FF, H), layer_map),       # W2
        pl.BlockSpec((1, 6, H), layer_map),        # packed [bo,g1,b1,bb2,g2,b2]
    ]
    out_specs = [
        pl.BlockSpec((1, S, H), batch_map),        # token embeddings
        pl.BlockSpec((1, 1, H), batch_map),        # pooled sentence embedding
    ]

    tok, pool = pl.pallas_call(
        fused_forward_kernel,
        out_shape=(jax.ShapeDtypeStruct((B, S, H), jnp.float32),
                   jax.ShapeDtypeStruct((B, 1, H), jnp.float32)),
        grid_spec=pltpu.PrefetchScalarGridSpec(
            num_scalar_prefetch=0,
            grid=(B, L),
            in_specs=in_specs,
            out_specs=out_specs,
            scratch_shapes=[pltpu.VMEM((S, H), jnp.float32),   # resident activations
                            pltpu.VMEM((S, S), jnp.float32)]), # resident additive mask
        compiler_params=pltpu.CompilerParams(
            dimension_semantics=("parallel", "arbitrary")),
    )(emb, m_row, m_col, emb_ln_g, emb_ln_b,
      w["wqkv"], w["bqkv"], w["wo"], w["w1"], w["bb1"], w["w2"], w["pvec"])
    return tok, pool.reshape(B, H)


# ------------------------------- parameters -----------------------------------
def init_params(key):
    def nrm(k, shape, std=0.02):
        return std * jax.random.normal(k, shape, dtype=jnp.float32)

    keys = iter(jax.random.split(key, 64))
    p = {
        "word_emb": nrm(next(keys), (VOCAB, H)),
        "pos_emb": nrm(next(keys), (MAX_POS, H)),
        "type_emb": nrm(next(keys), (1, H)),
        "emb_ln_g": jnp.ones((1, H), jnp.float32),
        "emb_ln_b": jnp.zeros((1, H), jnp.float32),
        "layers": [],
    }
    for _ in range(L):
        layer = [
            nrm(next(keys), (H, H)), jnp.zeros((1, H), jnp.float32),    # Wq, bq
            nrm(next(keys), (H, H)), jnp.zeros((1, H), jnp.float32),    # Wk, bk
            nrm(next(keys), (H, H)), jnp.zeros((1, H), jnp.float32),    # Wv, bv
            nrm(next(keys), (H, H)), jnp.zeros((1, H), jnp.float32),    # Wo, bo
            jnp.ones((1, H), jnp.float32), jnp.zeros((1, H), jnp.float32),   # LN1
            nrm(next(keys), (H, FF)), jnp.zeros((1, FF), jnp.float32),  # W1, b1
            nrm(next(keys), (FF, H)), jnp.zeros((1, H), jnp.float32),   # W2, b2
            jnp.ones((1, H), jnp.float32), jnp.zeros((1, H), jnp.float32),   # LN2
        ]
        p["layers"].append(layer)
    return p


def prepare_stacked_weights(params):
    """Stack per-layer weights to (L, ...), fuse QKV, pack tiny vectors, cast
    MXU operands to bf16, and fold the 1/sqrt(HD) scale into Wq/bq."""
    def stack(i):
        return jnp.stack([layer[i] for layer in params["layers"]], axis=0)

    scale = jnp.float32(1.0 / (HD ** 0.5))
    wq, bq = stack(0) * scale, stack(1) * scale
    wk, bk = stack(2), stack(3)
    wv, bv = stack(4), stack(5)
    return {
        "wqkv": jnp.concatenate([wq, wk, wv], axis=-1).astype(jnp.bfloat16),  # (L,H,3H)
        "bqkv": jnp.concatenate([bq, bk, bv], axis=-1),                       # (L,1,3H)
        "wo": stack(6).astype(jnp.bfloat16),                                  # (L,H,H)
        "w1": stack(10).astype(jnp.bfloat16),                                 # (L,H,FF)
        "bb1": stack(11),                                                     # (L,1,FF)
        "w2": stack(12).astype(jnp.bfloat16),                                 # (L,FF,H)
        # packed rows: [bo, g1, b1, bb2, g2, b2]
        "pvec": jnp.concatenate([stack(7), stack(8), stack(9),
                                 stack(13), stack(14), stack(15)], axis=1),   # (L,6,H)
    }


# ------------------------------- forward --------------------------------------
def unixcoder_forward(params, source_ids):
    """Equivalent of UniXcoder.forward: returns (token_embeddings, sentence_embeddings)."""
    mask = (source_ids != PAD_ID)                                   # (B, S) bool
    mask_f = mask.astype(jnp.float32)

    # Roberta embeddings (gathers stay in plain JAX glue).
    mi = mask.astype(jnp.int32)
    pos_ids = jnp.cumsum(mi, axis=1) * mi + PAD_ID
    emb = (jnp.take(params["word_emb"], source_ids, axis=0)
           + jnp.take(params["pos_emb"], pos_ids, axis=0)
           + params["type_emb"][None, :, :])                        # (B, S, H)

    m_row = mask_f.reshape(B, S, 1)
    m_col = mask_f.reshape(B, 1, S)

    stacked = prepare_stacked_weights(params)
    token_embeddings, sentence_embeddings = run_fused(
        emb, m_row, m_col, params["emb_ln_g"], params["emb_ln_b"], stacked)
    return token_embeddings, sentence_embeddings


# ------------------------------- main ------------------------------------------
if __name__ == "__main__":
    key = jax.random.PRNGKey(0)
    k_param, k_ids = jax.random.split(key)
    params = init_params(k_param)

    source_ids = jax.random.randint(k_ids, (B, S), 2, VOCAB, dtype=jnp.int32)
    # introduce some padding in row 1 so the mask / pooling path is exercised
    source_ids = source_ids.at[1, -2:].set(PAD_ID)

    forward = jax.jit(unixcoder_forward)
    tok_emb, sent_emb = forward(params, source_ids)
    jax.block_until_ready((tok_emb, sent_emb))

    assert tok_emb.shape == (B, S, H)
    assert sent_emb.shape == (B, H)
    print("KERNEL_OK")
</pallas_src>

<mosaic_0001>
module attributes {stable_mosaic.version = 11 : i64} {
  func.func @fused_forward_kernel(%arg0: i32, %arg1: i32, %arg2: memref<1x8x32xf32, #tpu.memory_space<vmem>>, %arg3: memref<1x8x1xf32, #tpu.memory_space<vmem>>, %arg4: memref<1x1x8xf32, #tpu.memory_space<vmem>>, %arg5: memref<1x32xf32, #tpu.memory_space<vmem>>, %arg6: memref<1x32xf32, #tpu.memory_space<vmem>>, %arg7: memref<1x32x96xbf16, #tpu.memory_space<vmem>>, %arg8: memref<1x1x96xf32, #tpu.memory_space<vmem>>, %arg9: memref<1x32x32xbf16, #tpu.memory_space<vmem>>, %arg10: memref<1x32x64xbf16, #tpu.memory_space<vmem>>, %arg11: memref<1x1x64xf32, #tpu.memory_space<vmem>>, %arg12: memref<1x64x32xbf16, #tpu.memory_space<vmem>>, %arg13: memref<1x6x32xf32, #tpu.memory_space<vmem>>, %arg14: memref<1x8x32xf32, #tpu.memory_space<vmem>>, %arg15: memref<1x1x32xf32, #tpu.memory_space<vmem>>, %arg16: memref<8x32xf32, #tpu.memory_space<vmem>>, %arg17: memref<8x8xf32, #tpu.memory_space<vmem>>) attributes {dimension_semantics = [#tpu.dimension_semantics<parallel>, #tpu.dimension_semantics<arbitrary>], iteration_bounds = array<i64: 2, 2>, scalar_prefetch = 0 : i64, scratch_operands = 2 : i64, tpu.core_type = #tpu.core_type<tc>, window_params = [{transform_indices = @transform_0, window_bounds = array<i64: 1, 8, 32>}, {transform_indices = @transform_1, window_bounds = array<i64: 1, 8, 1>}, {transform_indices = @transform_2, window_bounds = array<i64: 1, 1, 8>}, {pipeline_mode = #tpu.pipeline_mode<synchronous>, transform_indices = @transform_3, window_bounds = array<i64: 1, 32>}, {pipeline_mode = #tpu.pipeline_mode<synchronous>, transform_indices = @transform_4, window_bounds = array<i64: 1, 32>}, {transform_indices = @transform_5, window_bounds = array<i64: 1, 32, 96>}, {transform_indices = @transform_6, window_bounds = array<i64: 1, 1, 96>}, {transform_indices = @transform_7, window_bounds = array<i64: 1, 32, 32>}, {transform_indices = @transform_8, window_bounds = array<i64: 1, 32, 64>}, {transform_indices = @transform_9, window_bounds = array<i64: 1, 1, 64>}, {transform_indices = @transform_10, window_bounds = array<i64: 1, 64, 32>}, {transform_indices = @transform_11, window_bounds = array<i64: 1, 6, 32>}, {transform_indices = @transform_12, window_bounds = array<i64: 1, 8, 32>}, {transform_indices = @transform_13, window_bounds = array<i64: 1, 1, 32>}]} {
    %c0_i32 = arith.constant 0 : i32
    %0 = arith.cmpi eq, %arg1, %c0_i32 : i32
    %1 = arith.extui %0 : i1 to i32
    %c0_i32_0 = arith.constant 0 : i32
    %2 = arith.cmpi ne, %1, %c0_i32_0 : i32
    scf.if %2 {
      %c0_65 = arith.constant 0 : index
      %c0_66 = arith.constant 0 : index
      %c0_67 = arith.constant 0 : index
      %188 = vector.load %arg2[%c0_65, %c0_66, %c0_67] : memref<1x8x32xf32, #tpu.memory_space<vmem>>, vector<1x8x32xf32>
      %189 = vector.shape_cast %188 : vector<1x8x32xf32> to vector<8x32xf32>
      %c0_68 = arith.constant 0 : index
      %c0_69 = arith.constant 0 : index
      %190 = vector.load %arg5[%c0_68, %c0_69] : memref<1x32xf32, #tpu.memory_space<vmem>>, vector<1x32xf32>
      %c0_70 = arith.constant 0 : index
      %c0_71 = arith.constant 0 : index
      %191 = vector.load %arg6[%c0_70, %c0_71] : memref<1x32xf32, #tpu.memory_space<vmem>>, vector<1x32xf32>
      %cst_72 = arith.constant dense<0.000000e+00> : vector<8xf32>
      %192 = vector.multi_reduction <add>, %189, %cst_72 [1] : vector<8x32xf32> to vector<8xf32>
      %193 = vector.shape_cast %192 : vector<8xf32> to vector<8x1xf32>
      %cst_73 = arith.constant 3.200000e+01 : f32
      %194 = vector.broadcast %cst_73 : f32 to vector<8x1xf32>
      %195 = arith.divf %193, %194 : vector<8x1xf32>
      %196 = vector.broadcast %195 : vector<8x1xf32> to vector<8x32xf32>
      %197 = arith.subf %189, %196 : vector<8x32xf32>
      %198 = arith.mulf %197, %197 : vector<8x32xf32>
      %cst_74 = arith.constant dense<0.000000e+00> : vector<8xf32>
      %199 = vector.multi_reduction <add>, %198, %cst_74 [1] : vector<8x32xf32> to vector<8xf32>
      %200 = vector.shape_cast %199 : vector<8xf32> to vector<8x1xf32>
      %cst_75 = arith.constant 3.200000e+01 : f32
      %201 = vector.broadcast %cst_75 : f32 to vector<8x1xf32>
      %202 = arith.divf %200, %201 : vector<8x1xf32>
      %203 = vector.broadcast %195 : vector<8x1xf32> to vector<8x32xf32>
      %204 = arith.subf %189, %203 : vector<8x32xf32>
      %cst_76 = arith.constant 9.99999974E-6 : f32
      %205 = vector.broadcast %cst_76 : f32 to vector<8x1xf32>
      %206 = arith.addf %202, %205 : vector<8x1xf32>
      %207 = math.rsqrt %206 : vector<8x1xf32>
      %208 = vector.broadcast %207 : vector<8x1xf32> to vector<8x32xf32>
      %209 = arith.mulf %204, %208 : vector<8x32xf32>
      %210 = vector.broadcast %190 : vector<1x32xf32> to vector<8x32xf32>
      %211 = arith.mulf %209, %210 : vector<8x32xf32>
      %212 = vector.broadcast %191 : vector<1x32xf32> to vector<8x32xf32>
      %213 = arith.addf %211, %212 : vector<8x32xf32>
      %c0_77 = arith.constant 0 : index
      %c0_78 = arith.constant 0 : index
      %214 = vector.load %arg16[%c0_77, %c0_78] : memref<8x32xf32, #tpu.memory_space<vmem>>, vector<8x32xf32>
      tpu.vector_store %arg16[%c0_77, %c0_78], %213 {strides = array<i32>} : memref<8x32xf32, #tpu.memory_space<vmem>>, vector<8x32xf32>,
      %c0_79 = arith.constant 0 : index
      %c0_80 = arith.constant 0 : index
      %c0_81 = arith.constant 0 : index
      %215 = vector.load %arg3[%c0_79, %c0_80, %c0_81] : memref<1x8x1xf32, #tpu.memory_space<vmem>>, vector<1x8x1xf32>
      %216 = vector.shape_cast %215 : vector<1x8x1xf32> to vector<8x1xf32>
      %c0_82 = arith.constant 0 : index
      %c0_83 = arith.constant 0 : index
      %c0_84 = arith.constant 0 : index
      %217 = vector.load %arg4[%c0_82, %c0_83, %c0_84] : memref<1x1x8xf32, #tpu.memory_space<vmem>>, vector<1x1x8xf32>
      %218 = vector.shape_cast %217 : vector<1x1x8xf32> to vector<1x8xf32>
      %219 = vector.broadcast %216 : vector<8x1xf32> to vector<8x8xf32>
      %220 = vector.broadcast %218 : vector<1x8xf32> to vector<8x8xf32>
      %221 = arith.mulf %219, %220 : vector<8x8xf32>
      %cst_85 = arith.constant 1.000000e+00 : f32
      %222 = vector.broadcast %cst_85 : f32 to vector<8x8xf32>
      %223 = arith.subf %222, %221 : vector<8x8xf32>
      %cst_86 = arith.constant -1.000000e+09 : f32
      %224 = vector.broadcast %cst_86 : f32 to vector<8x8xf32>
      %225 = arith.mulf %223, %224 : vector<8x8xf32>
      %c0_87 = arith.constant 0 : index
      %c0_88 = arith.constant 0 : index
      %226 = vector.load %arg17[%c0_87, %c0_88] : memref<8x8xf32, #tpu.memory_space<vmem>>, vector<8x8xf32>
      tpu.vector_store %arg17[%c0_87, %c0_88], %225 {strides = array<i32>} : memref<8x8xf32, #tpu.memory_space<vmem>>, vector<8x8xf32>,
    } else {
    }
    %c0 = arith.constant 0 : index
    %c0_1 = arith.constant 0 : index
    %3 = vector.load %arg16[%c0, %c0_1] : memref<8x32xf32, #tpu.memory_space<vmem>>, vector<8x32xf32>
    %c0_2 = arith.constant 0 : index
    %c0_3 = arith.constant 0 : index
    %4 = vector.load %arg17[%c0_2, %c0_3] : memref<8x8xf32, #tpu.memory_space<vmem>>, vector<8x8xf32>
    %c0_4 = arith.constant 0 : index
    %c0_5 = arith.constant 0 : index
    %c0_6 = arith.constant 0 : index
    %5 = vector.load %arg13[%c0_4, %c0_5, %c0_6] : memref<1x6x32xf32, #tpu.memory_space<vmem>>, vector<1x6x32xf32>
    %6 = vector.shape_cast %5 : vector<1x6x32xf32> to vector<6x32xf32>
    %7 = vector.extract_strided_slice %6 {offsets = [0, 0], sizes = [1, 32], strides = [1, 1]} : vector<6x32xf32> to vector<1x32xf32>
    %8 = vector.extract_strided_slice %6 {offsets = [1, 0], sizes = [1, 32], strides = [1, 1]} : vector<6x32xf32> to vector<1x32xf32>
    %9 = vector.extract_strided_slice %6 {offsets = [2, 0], sizes = [1, 32], strides = [1, 1]} : vector<6x32xf32> to vector<1x32xf32>
    %10 = vector.extract_strided_slice %6 {offsets = [3, 0], sizes = [1, 32], strides = [1, 1]} : vector<6x32xf32> to vector<1x32xf32>
    %11 = vector.extract_strided_slice %6 {offsets = [4, 0], sizes = [1, 32], strides = [1, 1]} : vector<6x32xf32> to vector<1x32xf32>
    %12 = vector.extract_strided_slice %6 {offsets = [5, 0], sizes = [1, 32], strides = [1, 1]} : vector<6x32xf32> to vector<1x32xf32>
    %13 = arith.truncf %3 : vector<8x32xf32> to vector<8x32xbf16>
    %c0_7 = arith.constant 0 : index
    %c0_8 = arith.constant 0 : index
    %c0_9 = arith.constant 0 : index
    %14 = vector.load %arg7[%c0_7, %c0_8, %c0_9] : memref<1x32x96xbf16, #tpu.memory_space<vmem>>, vector<1x32x96xbf16>
    %15 = vector.shape_cast %14 : vector<1x32x96xbf16> to vector<32x96xbf16>
    %cst = arith.constant dense<0.000000e+00> : vector<8x96xf32>
    %16 = tpu.matmul %13, %15, %cst {dimension_numbers = #tpu.dot_dimension_numbers<[1], [0], [0], [1], [0, 0, 1, 1], [], []>} : vector<8x32xbf16>, vector<32x96xbf16>, vector<8x96xf32> -> vector<8x96xf32>
    %c0_10 = arith.constant 0 : index
    %c0_11 = arith.constant 0 : index
    %c0_12 = arith.constant 0 : index
    %17 = vector.load %arg8[%c0_10, %c0_11, %c0_12] : memref<1x1x96xf32, #tpu.memory_space<vmem>>, vector<1x1x96xf32>
    %18 = vector.shape_cast %17 : vector<1x1x96xf32> to vector<1x96xf32>
    %19 = vector.broadcast %18 : vector<1x96xf32> to vector<8x96xf32>
    %20 = arith.addf %16, %19 : vector<8x96xf32>
    %21 = arith.truncf %20 : vector<8x96xf32> to vector<8x96xbf16>
    %c0_13 = arith.constant 0 : index
    %c0_14 = arith.constant 0 : index
    %c0_15 = arith.constant 0 : index
    %22 = vector.load %arg9[%c0_13, %c0_14, %c0_15] : memref<1x32x32xbf16, #tpu.memory_space<vmem>>, vector<1x32x32xbf16>
    %23 = vector.shape_cast %22 : vector<1x32x32xbf16> to vector<32x32xbf16>
    %cst_16 = arith.constant 0.000000e+00 : f32
    %24 = vector.broadcast %cst_16 : f32 to vector<8x32xf32>
    %25 = vector.extract_strided_slice %21 {offsets = [0, 0], sizes = [8, 8], strides = [1, 1]} : vector<8x96xbf16> to vector<8x8xbf16>
    %26 = vector.extract_strided_slice %21 {offsets = [0, 32], sizes = [8, 8], strides = [1, 1]} : vector<8x96xbf16> to vector<8x8xbf16>
    %27 = vector.extract_strided_slice %21 {offsets = [0, 64], sizes = [8, 8], strides = [1, 1]} : vector<8x96xbf16> to vector<8x8xbf16>
    %cst_17 = arith.constant dense<0.000000e+00> : vector<8x8xf32>
    %28 = tpu.matmul %25, %26, %cst_17 {dimension_numbers = #tpu.dot_dimension_numbers<[1], [1], [0], [0], [0, 0, 1, 0], [], []>} : vector<8x8xbf16>, vector<8x8xbf16>, vector<8x8xf32> -> vector<8x8xf32>
    %29 = arith.addf %28, %4 : vector<8x8xf32>
    %cst_18 = arith.constant dense<0xFF800000> : vector<8xf32>
    %30 = vector.multi_reduction <maximumf>, %29, %cst_18 [1] : vector<8x8xf32> to vector<8xf32>
    %31 = vector.shape_cast %30 : vector<8xf32> to vector<8x1xf32>
    %32 = vector.broadcast %31 : vector<8x1xf32> to vector<8x8xf32>
    %33 = arith.subf %29, %32 : vector<8x8xf32>
    %34 = math.exp %33 : vector<8x8xf32>
    %cst_19 = arith.constant dense<0.000000e+00> : vector<8xf32>
    %35 = vector.multi_reduction <add>, %34, %cst_19 [1] : vector<8x8xf32> to vector<8xf32>
    %36 = vector.shape_cast %35 : vector<8xf32> to vector<8x1xf32>
    %37 = tpu.reciprocal %36 {approx = true} : vector<8x1xf32> -> vector<8x1xf32>
    %38 = vector.broadcast %37 : vector<8x1xf32> to vector<8x8xf32>
    %39 = arith.mulf %34, %38 : vector<8x8xf32>
    %40 = arith.truncf %39 : vector<8x8xf32> to vector<8x8xbf16>
    %cst_20 = arith.constant dense<0.000000e+00> : vector<8x8xf32>
    %41 = tpu.matmul %40, %27, %cst_20 {dimension_numbers = #tpu.dot_dimension_numbers<[1], [0], [0], [1], [0, 0, 1, 1], [], []>} : vector<8x8xbf16>, vector<8x8xbf16>, vector<8x8xf32> -> vector<8x8xf32>
    %42 = arith.truncf %41 : vector<8x8xf32> to vector<8x8xbf16>
    %43 = vector.extract_strided_slice %23 {offsets = [0, 0], sizes = [8, 32], strides = [1, 1]} : vector<32x32xbf16> to vector<8x32xbf16>
    %cst_21 = arith.constant dense<0.000000e+00> : vector<8x32xf32>
    %44 = tpu.matmul %42, %43, %cst_21 {dimension_numbers = #tpu.dot_dimension_numbers<[1], [0], [0], [1], [0, 0, 1, 1], [], []>} : vector<8x8xbf16>, vector<8x32xbf16>, vector<8x32xf32> -> vector<8x32xf32>
    %45 = arith.addf %24, %44 : vector<8x32xf32>
    %46 = vector.extract_strided_slice %21 {offsets = [0, 8], sizes = [8, 8], strides = [1, 1]} : vector<8x96xbf16> to vector<8x8xbf16>
    %47 = vector.extract_strided_slice %21 {offsets = [0, 40], sizes = [8, 8], strides = [1, 1]} : vector<8x96xbf16> to vector<8x8xbf16>
    %48 = vector.extract_strided_slice %21 {offsets = [0, 72], sizes = [8, 8], strides = [1, 1]} : vector<8x96xbf16> to vector<8x8xbf16>
    %cst_22 = arith.constant dense<0.000000e+00> : vector<8x8xf32>
    %49 = tpu.matmul %46, %47, %cst_22 {dimension_numbers = #tpu.dot_dimension_numbers<[1], [1], [0], [0], [0, 0, 1, 0], [], []>} : vector<8x8xbf16>, vector<8x8xbf16>, vector<8x8xf32> -> vector<8x8xf32>
    %50 = arith.addf %49, %4 : vector<8x8xf32>
    %cst_23 = arith.constant dense<0xFF800000> : vector<8xf32>
    %51 = vector.multi_reduction <maximumf>, %50, %cst_23 [1] : vector<8x8xf32> to vector<8xf32>
    %52 = vector.shape_cast %51 : vector<8xf32> to vector<8x1xf32>
    %53 = vector.broadcast %52 : vector<8x1xf32> to vector<8x8xf32>
    %54 = arith.subf %50, %53 : vector<8x8xf32>
    %55 = math.exp %54 : vector<8x8xf32>
    %cst_24 = arith.constant dense<0.000000e+00> : vector<8xf32>
    %56 = vector.multi_reduction <add>, %55, %cst_24 [1] : vector<8x8xf32> to vector<8xf32>
    %57 = vector.shape_cast %56 : vector<8xf32> to vector<8x1xf32>
    %58 = tpu.reciprocal %57 {approx = true} : vector<8x1xf32> -> vector<8x1xf32>
    %59 = vector.broadcast %58 : vector<8x1xf32> to vector<8x8xf32>
    %60 = arith.mulf %55, %59 : vector<8x8xf32>
    %61 = arith.truncf %60 : vector<8x8xf32> to vector<8x8xbf16>
    %cst_25 = arith.constant dense<0.000000e+00> : vector<8x8xf32>
    %62 = tpu.matmul %61, %48, %cst_25 {dimension_numbers = #tpu.dot_dimension_numbers<[1], [0], [0], [1], [0, 0, 1, 1], [], []>} : vector<8x8xbf16>, vector<8x8xbf16>, vector<8x8xf32> -> vector<8x8xf32>
    %63 = arith.truncf %62 : vector<8x8xf32> to vector<8x8xbf16>
    %64 = vector.extract_strided_slice %23 {offsets = [8, 0], sizes = [8, 32], strides = [1, 1]} : vector<32x32xbf16> to vector<8x32xbf16>
    %cst_26 = arith.constant dense<0.000000e+00> : vector<8x32xf32>
    %65 = tpu.matmul %63, %64, %cst_26 {dimension_numbers = #tpu.dot_dimension_numbers<[1], [0], [0], [1], [0, 0, 1, 1], [], []>} : vector<8x8xbf16>, vector<8x32xbf16>, vector<8x32xf32> -> vector<8x32xf32>
    %66 = arith.addf %45, %65 : vector<8x32xf32>
    %67 = vector.extract_strided_slice %21 {offsets = [0, 16], sizes = [8, 8], strides = [1, 1]} : vector<8x96xbf16> to vector<8x8xbf16>
    %68 = vector.extract_strided_slice %21 {offsets = [0, 48], sizes = [8, 8], strides = [1, 1]} : vector<8x96xbf16> to vector<8x8xbf16>
    %69 = vector.extract_strided_slice %21 {offsets = [0, 80], sizes = [8, 8], strides = [1, 1]} : vector<8x96xbf16> to vector<8x8xbf16>
    %cst_27 = arith.constant dense<0.000000e+00> : vector<8x8xf32>
    %70 = tpu.matmul %67, %68, %cst_27 {dimension_numbers = #tpu.dot_dimension_numbers<[1], [1], [0], [0], [0, 0, 1, 0], [], []>} : vector<8x8xbf16>, vector<8x8xbf16>, vector<8x8xf32> -> vector<8x8xf32>
    %71 = arith.addf %70, %4 : vector<8x8xf32>
    %cst_28 = arith.constant dense<0xFF800000> : vector<8xf32>
    %72 = vector.multi_reduction <maximumf>, %71, %cst_28 [1] : vector<8x8xf32> to vector<8xf32>
    %73 = vector.shape_cast %72 : vector<8xf32> to vector<8x1xf32>
    %74 = vector.broadcast %73 : vector<8x1xf32> to vector<8x8xf32>
    %75 = arith.subf %71, %74 : vector<8x8xf32>
    %76 = math.exp %75 : vector<8x8xf32>
    %cst_29 = arith.constant dense<0.000000e+00> : vector<8xf32>
    %77 = vector.multi_reduction <add>, %76, %cst_29 [1] : vector<8x8xf32> to vector<8xf32>
    %78 = vector.shape_cast %77 : vector<8xf32> to vector<8x1xf32>
    %79 = tpu.reciprocal %78 {approx = true} : vector<8x1xf32> -> vector<8x1xf32>
    %80 = vector.broadcast %79 : vector<8x1xf32> to vector<8x8xf32>
    %81 = arith.mulf %76, %80 : vector<8x8xf32>
    %82 = arith.truncf %81 : vector<8x8xf32> to vector<8x8xbf16>
    %cst_30 = arith.constant dense<0.000000e+00> : vector<8x8xf32>
    %83 = tpu.matmul %82, %69, %cst_30 {dimension_numbers = #tpu.dot_dimension_numbers<[1], [0], [0], [1], [0, 0, 1, 1], [], []>} : vector<8x8xbf16>, vector<8x8xbf16>, vector<8x8xf32> -> vector<8x8xf32>
    %84 = arith.truncf %83 : vector<8x8xf32> to vector<8x8xbf16>
    %85 = vector.extract_strided_slice %23 {offsets = [16, 0], sizes = [8, 32], strides = [1, 1]} : vector<32x32xbf16> to vector<8x32xbf16>
    %cst_31 = arith.constant dense<0.000000e+00> : vector<8x32xf32>
    %86 = tpu.matmul %84, %85, %cst_31 {dimension_numbers = #tpu.dot_dimension_numbers<[1], [0], [0], [1], [0, 0, 1, 1], [], []>} : vector<8x8xbf16>, vector<8x32xbf16>, vector<8x32xf32> -> vector<8x32xf32>
    %87 = arith.addf %66, %86 : vector<8x32xf32>
    %88 = vector.extract_strided_slice %21 {offsets = [0, 24], sizes = [8, 8], strides = [1, 1]} : vector<8x96xbf16> to vector<8x8xbf16>
    %89 = vector.extract_strided_slice %21 {offsets = [0, 56], sizes = [8, 8], strides = [1, 1]} : vector<8x96xbf16> to vector<8x8xbf16>
    %90 = vector.extract_strided_slice %21 {offsets = [0, 88], sizes = [8, 8], strides = [1, 1]} : vector<8x96xbf16> to vector<8x8xbf16>
    %cst_32 = arith.constant dense<0.000000e+00> : vector<8x8xf32>
    %91 = tpu.matmul %88, %89, %cst_32 {dimension_numbers = #tpu.dot_dimension_numbers<[1], [1], [0], [0], [0, 0, 1, 0], [], []>} : vector<8x8xbf16>, vector<8x8xbf16>, vector<8x8xf32> -> vector<8x8xf32>
    %92 = arith.addf %91, %4 : vector<8x8xf32>
    %cst_33 = arith.constant dense<0xFF800000> : vector<8xf32>
    %93 = vector.multi_reduction <maximumf>, %92, %cst_33 [1] : vector<8x8xf32> to vector<8xf32>
    %94 = vector.shape_cast %93 : vector<8xf32> to vector<8x1xf32>
    %95 = vector.broadcast %94 : vector<8x1xf32> to vector<8x8xf32>
    %96 = arith.subf %92, %95 : vector<8x8xf32>
    %97 = math.exp %96 : vector<8x8xf32>
    %cst_34 = arith.constant dense<0.000000e+00> : vector<8xf32>
    %98 = vector.multi_reduction <add>, %97, %cst_34 [1] : vector<8x8xf32> to vector<8xf32>
    %99 = vector.shape_cast %98 : vector<8xf32> to vector<8x1xf32>
    %100 = tpu.reciprocal %99 {approx = true} : vector<8x1xf32> -> vector<8x1xf32>
    %101 = vector.broadcast %100 : vector<8x1xf32> to vector<8x8xf32>
    %102 = arith.mulf %97, %101 : vector<8x8xf32>
    %103 = arith.truncf %102 : vector<8x8xf32> to vector<8x8xbf16>
    %cst_35 = arith.constant dense<0.000000e+00> : vector<8x8xf32>
    %104 = tpu.matmul %103, %90, %cst_35 {dimension_numbers = #tpu.dot_dimension_numbers<[1], [0], [0], [1], [0, 0, 1, 1], [], []>} : vector<8x8xbf16>, vector<8x8xbf16>, vector<8x8xf32> -> vector<8x8xf32>
    %105 = arith.truncf %104 : vector<8x8xf32> to vector<8x8xbf16>
    %106 = vector.extract_strided_slice %23 {offsets = [24, 0], sizes = [8, 32], strides = [1, 1]} : vector<32x32xbf16> to vector<8x32xbf16>
    %cst_36 = arith.constant dense<0.000000e+00> : vector<8x32xf32>
    %107 = tpu.matmul %105, %106, %cst_36 {dimension_numbers = #tpu.dot_dimension_numbers<[1], [0], [0], [1], [0, 0, 1, 1], [], []>} : vector<8x8xbf16>, vector<8x32xbf16>, vector<8x32xf32> -> vector<8x32xf32>
    %108 = arith.addf %87, %107 : vector<8x32xf32>
    %109 = vector.broadcast %7 : vector<1x32xf32> to vector<8x32xf32>
    %110 = arith.addf %108, %109 : vector<8x32xf32>
    %111 = arith.addf %110, %3 : vector<8x32xf32>
    %cst_37 = arith.constant dense<0.000000e+00> : vector<8xf32>
    %112 = vector.multi_reduction <add>, %111, %cst_37 [1] : vector<8x32xf32> to vector<8xf32>
    %113 = vector.shape_cast %112 : vector<8xf32> to vector<8x1xf32>
    %cst_38 = arith.constant 3.200000e+01 : f32
    %114 = vector.broadcast %cst_38 : f32 to vector<8x1xf32>
    %115 = arith.divf %113, %114 : vector<8x1xf32>
    %116 = vector.broadcast %115 : vector<8x1xf32> to vector<8x32xf32>
    %117 = arith.subf %111, %116 : vector<8x32xf32>
    %118 = arith.mulf %117, %117 : vector<8x32xf32>
    %cst_39 = arith.constant dense<0.000000e+00> : vector<8xf32>
    %119 = vector.multi_reduction <add>, %118, %cst_39 [1] : vector<8x32xf32> to vector<8xf32>
    %120 = vector.shape_cast %119 : vector<8xf32> to vector<8x1xf32>
    %cst_40 = arith.constant 3.200000e+01 : f32
    %121 = vector.broadcast %cst_40 : f32 to vector<8x1xf32>
    %122 = arith.divf %120, %121 : vector<8x1xf32>
    %123 = vector.broadcast %115 : vector<8x1xf32> to vector<8x32xf32>
    %124 = arith.subf %111, %123 : vector<8x32xf32>
    %cst_41 = arith.constant 9.99999974E-6 : f32
    %125 = vector.broadcast %cst_41 : f32 to vector<8x1xf32>
    %126 = arith.addf %122, %125 : vector<8x1xf32>
    %127 = math.rsqrt %126 : vector<8x1xf32>
    %128 = vector.broadcast %127 : vector<8x1xf32> to vector<8x32xf32>
    %129 = arith.mulf %124, %128 : vector<8x32xf32>
    %130 = vector.broadcast %8 : vector<1x32xf32> to vector<8x32xf32>
    %131 = arith.mulf %129, %130 : vector<8x32xf32>
    %132 = vector.broadcast %9 : vector<1x32xf32> to vector<8x32xf32>
    %133 = arith.addf %131, %132 : vector<8x32xf32>
    %134 = arith.truncf %133 : vector<8x32xf32> to vector<8x32xbf16>
    %c0_42 = arith.constant 0 : index
    %c0_43 = arith.constant 0 : index
    %c0_44 = arith.constant 0 : index
    %135 = vector.load %arg10[%c0_42, %c0_43, %c0_44] : memref<1x32x64xbf16, #tpu.memory_space<vmem>>, vector<1x32x64xbf16>
    %136 = vector.shape_cast %135 : vector<1x32x64xbf16> to vector<32x64xbf16>
    %cst_45 = arith.constant dense<0.000000e+00> : vector<8x64xf32>
    %137 = tpu.matmul %134, %136, %cst_45 {dimension_numbers = #tpu.dot_dimension_numbers<[1], [0], [0], [1], [0, 0, 1, 1], [], []>} : vector<8x32xbf16>, vector<32x64xbf16>, vector<8x64xf32> -> vector<8x64xf32>
    %c0_46 = arith.constant 0 : index
    %c0_47 = arith.constant 0 : index
    %c0_48 = arith.constant 0 : index
    %138 = vector.load %arg11[%c0_46, %c0_47, %c0_48] : memref<1x1x64xf32, #tpu.memory_space<vmem>>, vector<1x1x64xf32>
    %139 = vector.shape_cast %138 : vector<1x1x64xf32> to vector<1x64xf32>
    %140 = vector.broadcast %139 : vector<1x64xf32> to vector<8x64xf32>
    %141 = arith.addf %137, %140 : vector<8x64xf32>
    %142 = arith.mulf %141, %141 : vector<8x64xf32>
    %143 = arith.mulf %141, %142 : vector<8x64xf32>
    %cst_49 = arith.constant 4.471500e-02 : f32
    %144 = vector.broadcast %cst_49 : f32 to vector<8x64xf32>
    %145 = arith.mulf %144, %143 : vector<8x64xf32>
    %146 = arith.addf %141, %145 : vector<8x64xf32>
    %cst_50 = arith.constant 0.797884583 : f32
    %147 = vector.broadcast %cst_50 : f32 to vector<8x64xf32>
    %148 = arith.mulf %147, %146 : vector<8x64xf32>
    %149 = math.tanh %148 : vector<8x64xf32>
    %cst_51 = arith.constant 1.000000e+00 : f32
    %150 = vector.broadcast %cst_51 : f32 to vector<8x64xf32>
    %151 = arith.addf %150, %149 : vector<8x64xf32>
    %cst_52 = arith.constant 5.000000e-01 : f32
    %152 = vector.broadcast %cst_52 : f32 to vector<8x64xf32>
    %153 = arith.mulf %152, %151 : vector<8x64xf32>
    %154 = arith.mulf %141, %153 : vector<8x64xf32>
    %155 = arith.truncf %154 : vector<8x64xf32> to vector<8x64xbf16>
    %c0_53 = arith.constant 0 : index
    %c0_54 = arith.constant 0 : index
    %c0_55 = arith.constant 0 : index
    %156 = vector.load %arg12[%c0_53, %c0_54, %c0_55] : memref<1x64x32xbf16, #tpu.memory_space<vmem>>, vector<1x64x32xbf16>
    %157 = vector.shape_cast %156 : vector<1x64x32xbf16> to vector<64x32xbf16>
    %cst_56 = arith.constant dense<0.000000e+00> : vector<8x32xf32>
    %158 = tpu.matmul %155, %157, %cst_56 {dimension_numbers = #tpu.dot_dimension_numbers<[1], [0], [0], [1], [0, 0, 1, 1], [], []>} : vector<8x64xbf16>, vector<64x32xbf16>, vector<8x32xf32> -> vector<8x32xf32>
    %159 = vector.broadcast %10 : vector<1x32xf32> to vector<8x32xf32>
    %160 = arith.addf %158, %159 : vector<8x32xf32>
    %161 = arith.addf %160, %133 : vector<8x32xf32>
    %cst_57 = arith.constant dense<0.000000e+00> : vector<8xf32>
    %162 = vector.multi_reduction <add>, %161, %cst_57 [1] : vector<8x32xf32> to vector<8xf32>
    %163 = vector.shape_cast %162 : vector<8xf32> to vector<8x1xf32>
    %cst_58 = arith.constant 3.200000e+01 : f32
    %164 = vector.broadcast %cst_58 : f32 to vector<8x1xf32>
    %165 = arith.divf %163, %164 : vector<8x1xf32>
    %166 = vector.broadcast %165 : vector<8x1xf32> to vector<8x32xf32>
    %167 = arith.subf %161, %166 : vector<8x32xf32>
    %168 = arith.mulf %167, %167 : vector<8x32xf32>
    %cst_59 = arith.constant dense<0.000000e+00> : vector<8xf32>
    %169 = vector.multi_reduction <add>, %168, %cst_59 [1] : vector<8x32xf32> to vector<8xf32>
    %170 = vector.shape_cast %169 : vector<8xf32> to vector<8x1xf32>
    %cst_60 = arith.constant 3.200000e+01 : f32
    %171 = vector.broadcast %cst_60 : f32 to vector<8x1xf32>
    %172 = arith.divf %170, %171 : vector<8x1xf32>
    %173 = vector.broadcast %165 : vector<8x1xf32> to vector<8x32xf32>
    %174 = arith.subf %161, %173 : vector<8x32xf32>
    %cst_61 = arith.constant 9.99999974E-6 : f32
    %175 = vector.broadcast %cst_61 : f32 to vector<8x1xf32>
    %176 = arith.addf %172, %175 : vector<8x1xf32>
    %177 = math.rsqrt %176 : vector<8x1xf32>
    %178 = vector.broadcast %177 : vector<8x1xf32> to vector<8x32xf32>
    %179 = arith.mulf %174, %178 : vector<8x32xf32>
    %180 = vector.broadcast %11 : vector<1x32xf32> to vector<8x32xf32>
    %181 = arith.mulf %179, %180 : vector<8x32xf32>
    %182 = vector.broadcast %12 : vector<1x32xf32> to vector<8x32xf32>
    %183 = arith.addf %181, %182 : vector<8x32xf32>
    %c0_62 = arith.constant 0 : index
    %c0_63 = arith.constant 0 : index
    %184 = vector.load %arg16[%c0_62, %c0_63] : memref<8x32xf32, #tpu.memory_space<vmem>>, vector<8x32xf32>
    tpu.vector_store %arg16[%c0_62, %c0_63], %183 {strides = array<i32>} : memref<8x32xf32, #tpu.memory_space<vmem>>, vector<8x32xf32>,
    %c1_i32 = arith.constant 1 : i32
    %185 = arith.cmpi eq, %arg1, %c1_i32 : i32
    %186 = arith.extui %185 : i1 to i32
    %c0_i32_64 = arith.constant 0 : i32
    %187 = arith.cmpi ne, %186, %c0_i32_64 : i32
    scf.if %187 {
      %c0_65 = arith.constant 0 : index
      %c0_66 = arith.constant 0 : index
      %c0_67 = arith.constant 0 : index
      %188 = vector.load %arg14[%c0_65, %c0_66, %c0_67] : memref<1x8x32xf32, #tpu.memory_space<vmem>>, vector<1x8x32xf32>
      %189 = vector.shape_cast %188 : vector<1x8x32xf32> to vector<8x32xf32>
      %190 = vector.shape_cast %183 : vector<8x32xf32> to vector<1x8x32xf32>
      tpu.vector_store %arg14[%c0_65, %c0_66, %c0_67], %190 {strides = array<i32>} : memref<1x8x32xf32, #tpu.memory_space<vmem>>, vector<1x8x32xf32>,
      %c0_68 = arith.constant 0 : index
      %c0_69 = arith.constant 0 : index
      %c0_70 = arith.constant 0 : index
      %191 = vector.load %arg3[%c0_68, %c0_69, %c0_70] : memref<1x8x1xf32, #tpu.memory_space<vmem>>, vector<1x8x1xf32>
      %192 = vector.shape_cast %191 : vector<1x8x1xf32> to vector<8x1xf32>
      %193 = vector.broadcast %192 : vector<8x1xf32> to vector<8x32xf32>
      %194 = arith.mulf %183, %193 : vector<8x32xf32>
      %cst_71 = arith.constant dense<0.000000e+00> : vector<32xf32>
      %195 = vector.multi_reduction <add>, %194, %cst_71 [0] : vector<8x32xf32> to vector<32xf32>
      %196 = vector.shape_cast %195 : vector<32xf32> to vector<1x32xf32>
      %cst_72 = arith.constant dense<0.000000e+00> : vector<1xf32>
      %197 = vector.multi_reduction <add>, %192, %cst_72 [0] : vector<8x1xf32> to vector<1xf32>
      %198 = vector.shape_cast %197 : vector<1xf32> to vector<1x1xf32>
      %cst_73 = arith.constant 1.000000e+00 : f32
      %199 = vector.broadcast %cst_73 : f32 to vector<1x1xf32>
      %200 = arith.maximumf %198, %199 : vector<1x1xf32>
      %201 = vector.broadcast %200 : vector<1x1xf32> to vector<1x32xf32>
      %202 = arith.divf %196, %201 : vector<1x32xf32>
      %c0_74 = arith.constant 0 : index
      %c0_75 = arith.constant 0 : index
      %c0_76 = arith.constant 0 : index
      %203 = vector.load %arg15[%c0_74, %c0_75, %c0_76] : memref<1x1x32xf32, #tpu.memory_space<vmem>>, vector<1x1x32xf32>
      %204 = vector.shape_cast %203 : vector<1x1x32xf32> to vector<1x32xf32>
      %205 = vector.shape_cast %202 : vector<1x32xf32> to vector<1x1x32xf32>
      tpu.vector_store %arg15[%c0_74, %c0_75, %c0_76], %205 {strides = array<i32>} : memref<1x1x32xf32, #tpu.memory_space<vmem>>, vector<1x1x32xf32>,
    } else {
    }
    return
  }
  func.func @transform_0(%arg0: i32, %arg1: i32) -> (i32, i32, i32) {
    %c0_i32 = arith.constant 0 : i32
    %c0_i32_0 = arith.constant 0 : i32
    %c0_i32_1 = arith.constant 0 : i32
    return %arg0, %c0_i32, %c0_i32_0 : i32, i32, i32
  }
  func.func @transform_1(%arg0: i32, %arg1: i32) -> (i32, i32, i32) {
    %c0_i32 = arith.constant 0 : i32
    %c0_i32_0 = arith.constant 0 : i32
    %c0_i32_1 = arith.constant 0 : i32
    return %arg0, %c0_i32, %c0_i32_0 : i32, i32, i32
  }
  func.func @transform_2(%arg0: i32, %arg1: i32) -> (i32, i32, i32) {
    %c0_i32 = arith.constant 0 : i32
    %c0_i32_0 = arith.constant 0 : i32
    %c0_i32_1 = arith.constant 0 : i32
    return %arg0, %c0_i32, %c0_i32_0 : i32, i32, i32
  }
  func.func @transform_3(%arg0: i32, %arg1: i32) -> (i32, i32) {
    %c0_i32 = arith.constant 0 : i32
    %c0_i32_0 = arith.constant 0 : i32
    %c0_i32_1 = arith.constant 0 : i32
    return %c0_i32, %c0_i32_0 : i32, i32
  }
  func.func @transform_4(%arg0: i32, %arg1: i32) -> (i32, i32) {
    %c0_i32 = arith.constant 0 : i32
    %c0_i32_0 = arith.constant 0 : i32
    %c0_i32_1 = arith.constant 0 : i32
    return %c0_i32, %c0_i32_0 : i32, i32
  }
  func.func @transform_5(%arg0: i32, %arg1: i32) -> (i32, i32, i32) {
    %c0_i32 = arith.constant 0 : i32
    %c0_i32_0 = arith.constant 0 : i32
    %c0_i32_1 = arith.constant 0 : i32
    return %arg1, %c0_i32, %c0_i32_0 : i32, i32, i32
  }
  func.func @transform_6(%arg0: i32, %arg1: i32) -> (i32, i32, i32) {
    %c0_i32 = arith.constant 0 : i32
    %c0_i32_0 = arith.constant 0 : i32
    %c0_i32_1 = arith.constant 0 : i32
    return %arg1, %c0_i32, %c0_i32_0 : i32, i32, i32
  }
  func.func @transform_7(%arg0: i32, %arg1: i32) -> (i32, i32, i32) {
    %c0_i32 = arith.constant 0 : i32
    %c0_i32_0 = arith.constant 0 : i32
    %c0_i32_1 = arith.constant 0 : i32
    return %arg1, %c0_i32, %c0_i32_0 : i32, i32, i32
  }
  func.func @transform_8(%arg0: i32, %arg1: i32) -> (i32, i32, i32) {
    %c0_i32 = arith.constant 0 : i32
    %c0_i32_0 = arith.constant 0 : i32
    %c0_i32_1 = arith.constant 0 : i32
    return %arg1, %c0_i32, %c0_i32_0 : i32, i32, i32
  }
  func.func @transform_9(%arg0: i32, %arg1: i32) -> (i32, i32, i32) {
    %c0_i32 = arith.constant 0 : i32
    %c0_i32_0 = arith.constant 0 : i32
    %c0_i32_1 = arith.constant 0 : i32
    return %arg1, %c0_i32, %c0_i32_0 : i32, i32, i32
  }
  func.func @transform_10(%arg0: i32, %arg1: i32) -> (i32, i32, i32) {
    %c0_i32 = arith.constant 0 : i32
    %c0_i32_0 = arith.constant 0 : i32
    %c0_i32_1 = arith.constant 0 : i32
    return %arg1, %c0_i32, %c0_i32_0 : i32, i32, i32
  }
  func.func @transform_11(%arg0: i32, %arg1: i32) -> (i32, i32, i32) {
    %c0_i32 = arith.constant 0 : i32
    %c0_i32_0 = arith.constant 0 : i32
    %c0_i32_1 = arith.constant 0 : i32
    return %arg1, %c0_i32, %c0_i32_0 : i32, i32, i32
  }
  func.func @transform_12(%arg0: i32, %arg1: i32) -> (i32, i32, i32) {
    %c0_i32 = arith.constant 0 : i32
    %c0_i32_0 = arith.constant 0 : i32
    %c0_i32_1 = arith.constant 0 : i32
    return %arg0, %c0_i32, %c0_i32_0 : i32, i32, i32
  }
  func.func @transform_13(%arg0: i32, %arg1: i32) -> (i32, i32, i32) {
    %c0_i32 = arith.constant 0 : i32
    %c0_i32_0 = arith.constant 0 : i32
    %c0_i32_1 = arith.constant 0 : i32
    return %arg0, %c0_i32, %c0_i32_0 : i32, i32, i32
  }
}

</mosaic_0001>

<bundles_post_ra>
// kernel: unixcoder_forward.1
= control target key start
LH: loop header
LB: loop body
LE: loop exit
PB: predicated region body
PF: predicated region fallthrough
CT: control target
= control target key end

     0   :  { %s2217_s0 = inlined_call_operand.vmem [shape: f32[2,8,32], index: 0, kind: input, shape index: {}]   ;;  %s2218_s1 = inlined_call_operand.vmem [shape: f32[2,8,1], index: 1, kind: input, shape index: {}]   ;;  %s2219_s2 = inlined_call_operand.vmem [shape: f32[2,1,8], index: 2, kind: input, shape index: {}]   ;;  %s2220_s3 = inlined_call_operand.vmem [shape: f32[1,32], index: 3, kind: input, shape index: {}]   ;;  %s2221_s4 = inlined_call_operand.vmem [shape: f32[1,32], index: 4, kind: input, shape index: {}]   ;;  %s2222_s5 = inlined_call_operand.vmem [shape: bf16[2,32,96], index: 5, kind: input, shape index: {}]   ;;  %s2223_s6 = inlined_call_operand.vmem [shape: f32[2,1,96], index: 6, kind: input, shape index: {}]   ;;  %s2224_s7 = inlined_call_operand.vmem [shape: bf16[2,32,32], index: 7, kind: input, shape index: {}]   ;;  %s2225_s8 = inlined_call_operand.vmem [shape: bf16[2,32,64], index: 8, kind: input, shape index: {}]   ;;  %s2226_s9 = inlined_call_operand.vmem [shape: f32[2,1,64], index: 9, kind: input, shape index: {}]   ;;  %s2227_s10 = inlined_call_operand.vmem [shape: bf16[2,64,32], index: 10, kind: input, shape index: {}]   ;;  %s2228_s11 = inlined_call_operand.vmem [shape: f32[2,6,32], index: 11, kind: input, shape index: {}]   ;;  %s2229_s12 = inlined_call_operand.hbm [shape: f32[2,8,32], index: 12, kind: output, shape index: {0}]   ;;  %s2230_s13 = inlined_call_operand.hbm [shape: f32[2,1,32], index: 13, kind: output, shape index: {1}]  }
   0x1   :  { %2247 = sst [smem:[#allocation23_spill]] %s2217_s0 }
   0x2   :  { %2248 = sst [smem:[#allocation24_spill]] %s2218_s1 }
   0x3   :  { %2249 = sst [smem:[#allocation25_spill]] %s2220_s3 }
   0x4   :  { %2250 = sst [smem:[#allocation26_spill]] %s2221_s4 }
   0x5   :  { %2251 = sst [smem:[#allocation27_spill]] %s2222_s5 }
   0x6   :  { %2252 = sst [smem:[#allocation28_spill]] %s2229_s12 }
   0x7   :  { %2253 = sst [smem:[#allocation29_spill]] %s2230_s13 }
   0x8   :  { %19 = vsyncpa [#allocation5], 0 }
   0x9   :  { %21 = vsyncpa [#allocation5 + $0x1], 0 }
   0xa   :  { %22 = vsyncpa [#allocation7], 0 }
   0xb   :  { %24 = vsyncpa [#allocation7 + $0x1], 0  ;;  %s1896_s25 = smov 0   ;;  %s1898_s26 = smov 0  }
   0xc   :  { %s1900_s27 = smov 0   ;;  %s1902_s28 = smov 0  }
   0xd   :  { %s1904_s29 = smov 0   ;;  %s1906_s30 = smov 0  }
   0xe   :  { %s1908_s14 = smov 0   ;;  %s1910_s15 = smov 0  }
   0xf LB: > { %2254 = sst [smem:[#allocation10_spill]] %s1781_s25  ;;  %s1472_s16 = sadd.s32 4294967295, %s1809_s15   ;;  %s1809_s15 = sphi %s1910_s15, %s30_s15   ;;  %s1805_s14 = sphi %s1908_s14, %s2292_s14   ;;  %s1801_s30 = sphi %s1906_s30, %s2291_s30   ;;  %s1797_s29 = sphi %s1904_s29, %s2290_s29   ;;  %s1793_s28 = sphi %s1902_s28, %s2289_s28   ;;  %s1789_s27 = sphi %s1900_s27, %s2288_s27   ;;  %s1785_s26 = sphi %s1898_s26, %s2287_s26   ;;  %s1781_s25 = sphi %s1896_s25, %s2286_s25  }
  0x10   : > { %2255 = sst [smem:[#allocation11_spill]] %s1785_s26  ;;  %s1473_s17 = sadd.s32 4294967294, %s1809_s15  }
  0x11   : > { %2256 = sst [smem:[#allocation12_spill]] %s1789_s27  ;;  %s39_s18 = sadd.s32 1, %s1801_s30 }
  0x12   : > { %2257 = sst [smem:[#allocation13_spill]] %s1793_s28  ;;  %p40_p0 = scmp.ge.s32.totalorder %s39_s18, 2 }
  0x13   : > { %2258 = sst [smem:[#allocation14_spill]] %s1797_s29  ;;  %s42_s19 = sadd.s32 1, %s1805_s14 }
  0x14   : > { %2259 = sst [smem:[#allocation15_spill]] %s1801_s30  ;;  %p361_p1 = scmp.ne.s32.totalorder %s1789_s27, %s1785_s26 }
  0x15   : > { %2260 = sst [smem:[#allocation16_spill]] %s1805_s14  ;;  %p362_p2 = scmp.eq.s32.totalorder %s1472_s16, 3 }
  0x16   : > { %2261 = sst [smem:[#allocation17_spill]] %s1809_s15  ;;  %s2294_s18 = smov (%p40_p0, %s39_s18), 0 }
  0x17   : > { %2262 = sst [smem:[#allocation18_spill]] %s2294_s18  ;;  %s2296_s19 = smov (!%p40_p0, %s42_s19), %s1805_s14 }
  0x18   : > { %p1945_p3 = por %p362_p2, %p361_p1  ;;  %p367_p4 = scmp.ne.s32.totalorder %s1785_s26, %s1781_s25 }
  0x19   : > { %p44_p5 = scmp.ge.s32.totalorder %s2296_s19, 2  ;;  %p368_p6 = scmp.eq.s32.totalorder %s1473_s17, 3 }
  0x1a   : > { %s2263_s20 = scalar_select %p1945_p3, 1, 0 }
  0x1b   : > { %p1476_p7 = scmp.ge.s32.totalorder %s1809_s15, 1  ;;  %p489_p8 = scmp.lt.s32.totalorder %s1809_s15, 5 }
  0x1c   : > { %2264 = sst [smem:[#allocation19_spill]] %s2263_s20  ;;  %s2298_s19 = smov (%p44_p5, %s2296_s19), 0 }
  0x1d   : > { %2265 = sst [smem:[#allocation20_spill]] %s2298_s19  ;;  %p1955_p9 = por %p368_p6, %p367_p4 }
  0x1e   : > { %p490_p10 = pnand %p1476_p7, %p489_p8  ;;  %s348_s22 = ssub.s32 %s1805_s14, %s2298_s19 }
  0x1f   : > { %s2266_s21 = scalar_select %p1955_p9, 1, 0 }
  0x20   : > { %s351_s23 = sadd.s32 1, %s1789_s27  ;;  %p349_p11 = scmp.eq.s32.totalorder %s348_s22, 0 }
  0x21   : > { %2267 = sst [smem:[#allocation21_spill]] %s2266_s21  ;;  %493 = sbr.rel (%p490_p10) target bundleno = 2822 (0xb06), region = 68 }
  0x22   : > { %s1963_s24 = scalar_select %p349_p11, %s1789_s27, %s351_s23  }
  0x23   : > { %s1966_s16 = sand.u32 (!%p490_p10), 1, %s1785_s26   ;;  %p573_p12 = scmp.lt.s32.totalorder (!%p490_p10), %s1797_s29, 1 }
  0x24   : > { %2268 = sst [smem:[#allocation22_spill]] %s1963_s24  ;;  %s1477_s17 = sshll.u32 (!%p490_p10), %s1966_s16, 3 }
  0x25   : > { %p584_p13 = scmp.lt.s32.totalorder (!%p490_p10), %s1793_s28, 1  ;;  %s2269_s0 = sld [smem:[#allocation23_spill]] (!%p490_p10) }
  0x26   : > { %s1972_s18 = scalar_select %p573_p12, %s1797_s29, 1 }
  0x27   : > { %s1975_s19 = scalar_select %p584_p13, %s1793_s28, 1 }
  0x28   : > { %s1478_s22 = sshll.u32 %s1972_s18, 3  ;;  %s2270_s1 = sld [smem:[#allocation24_spill]] }
  0x29   : > { %s1542_s13 = sshll.u32 %s1975_s19, 4  ;;  %s2271_s5 = sld [smem:[#allocation27_spill]] }
  0x2a   : > { %s2003_s27 = scalar_lea.vmem %s2224_s7, %s1542_s13  ;;  %s2008_s25 = scalar_lea.vmem %s2225_s8, %s1542_s13 }
  0x2b   : > { %s576_s26 = scalar_lea.vmem %s2269_s0, %s1478_s22  ;;  %s604_s12 = scalar_lea.vmem %s2226_s9, %s1975_s19 }
  0x2c   : > { %s1545_s20 = sshll.u32 %s1975_s19, 5  ;;  %s1488_s29 = sshll.u32 %s1975_s19, 3 }
  0x2d   : > { %s2019_s4 = scalar_lea.vmem %s2227_s10, %s1545_s20  ;;  %s2024_s23 = scalar_lea.vmem %s2228_s11, %s1488_s29 }
  0x2e   : > { %s1988_s15 = scalar_lea.vmem %s2270_s1, %s1478_s22  ;;  %s2272_s30 = sld [smem:[#allocation13_spill]] }
  0x2f   : > { %s1998_s28 = scalar_lea.vmem %s2271_s5, %s1542_s13  ;;  %s2026_s5 = scalar_lea.vmem [#allocation4], %s1477_s17 }
  0x30   : > { %s572_s13 = scalar_lea.vmem [#allocation6], %s1966_s16 }
  0x34   : > { %p1489_p0 = scmp.ne.s32.totalorder %s2272_s30, 0 }
  0x35   : > { %s2274_s17 = sld [smem:[#allocation25_spill]] (!%p1489_p0) }
  0x36   : > { %618 = sbr.rel (%p1489_p0) target bundleno = 329 (0x149), region = 72  ;;  %s2275_s22 = sld [smem:[#allocation26_spill]] (!%p1489_p0) }
  0x3b   : > { %v619_v0 = vld [vmem:[%s576_s26] sm:$0xff]  ;;  %vm622_vm0 = vcmask 261120   ;;  %v1811_v2 = vmov 32.0   ;;  %v1812_v4 = vmov 0   ;;  %s2273_s26 = scalar_lea.vmem %s2219_s2, %s1972_s18  ;;  %vm674_vm2 = vcmask 64512  }
  0x3c   : > { %v623_v1 = vsel %vm622_vm0, %v619_v0, 0.0  ;;  %1650 = vrcp.f32 %v1811_v2  ;;  %v661_v3 = vld [vmem:[%s1988_s15] sm:$0xff]  ;;  %1645 = vset.pattern.permute.xlu1 %v1812_v4  ;;  %1646 = vset.pattern.permute.xlu0 %v1812_v4 }
  0x3d   : > { %624 = vadd.xlane.f32.xlu0 %v623_v1  ;;  %665 = vperm.xlu1 %1645, %v661_v3   ;;  %v1649_v16 = vld [vmem:[%s2273_s26] ss:$0 sm:$0xff] }
  0x3e   : > { %v1647_v30 = vld [vmem:[%s2274_s17] ss:$0 sm:$0xff] }
  0x3f   : > { %v1648_v32 = vld [vmem:[%s2275_s22] ss:$0 sm:$0xff] }
  0x42   : > { %v1651_v5 = vpop.eup %1650 }
  0x43   : > { %v627_v6 = vmul.f32 32.0, %v1651_v5  ;;  %vm631_vm1 = vweird.f32 %v1651_v5 }
  0x45   : > { %v628_v7 = vsub.f32 1.0, %v627_v6 }
  0x47   : > { %v629_v8 = vmul.f32 %v1651_v5, %v628_v7 }
  0x49   : > { %v630_v9 = vadd.f32 %v1651_v5, %v629_v8 }
  0x4b   : > { %v632_v10 = vsel %vm631_vm1, %v1651_v5, %v630_v9 }
  0xaf   : > { %v666_v17 = vpop.permute.xlu1 %665 }
  0xb0   : > { %v625_v11 = vpop.xlane.xlu0 %624  ;;  %v671_v18 = vmul.f32 %v1649_v16, %v666_v17 }
  0xb1   : > { %v633_v12 = vmul.f32 %v632_v10, %v625_v11 }
  0xb2   : > { %v672_v19 = vsub.f32 1.0, %v671_v18 }
  0xb3   : > { %v634_v13 = vsub.f32 %v619_v0, %v633_v12 }
  0xb4   : > { %v673_v20 = vmul.f32 -1e+09, %v672_v19 }
  0xb5   : > { %v635_v14 = vmul.f32 %v634_v13, %v634_v13 }
  0xb6   : > { %675 = vst.msk [vmem:[#allocation3] sm:$0xff] %vm674_vm2, %v673_v20 }
  0xb7   : > { %v636_v15 = vsel %vm622_vm0, %v635_v14, 0.0 }
  0xb8   : > { %637 = vadd.xlane.f32.xlu0 %v636_v15 }
 0x12b   : > { %v638_v21 = vpop.xlane.xlu0 %637 }
 0x12c   : > { %v639_v22 = vmul.f32 %v638_v21, %v632_v10 }
 0x12e   : > { %v640_v23 = vadd.f32 1e-05, %v639_v22 }
 0x130   : > { %1652 = vrsqrt.f32 %v640_v23  ;;  %vm647_vm4 = vweird.f32 %v640_v23 }
 0x136   : > { %v1653_v24 = vpop.eup %1652 }
 0x137   : > { %v642_v25 = vmul.f32 %v1653_v24, %v640_v23  ;;  %vm648_vm3 = vweird.f32 %v1653_v24 }
 0x138   : > { %vm649_vm5 = vmor %vm647_vm4, %vm648_vm3 }
 0x139   : > { %v643_v26 = vmul.f32 %v1653_v24, %v642_v25 }
 0x13b   : > { %v644_v27 = vmul.f32 0.5, %v643_v26 }
 0x13d   : > { %v645_v28 = vsub.f32 1.5, %v644_v27 }
 0x13f   : > { %v646_v29 = vmul.f32 %v1653_v24, %v645_v28 }
 0x141   : > { %v650_v31 = vsel %vm649_vm5, %v1653_v24, %v646_v29 }
 0x142   : > { %v651_v33 = vmul.f32 %v650_v31, %v634_v13 }
 0x144   : > { %v655_v34 = vmul.f32 %v1647_v30, %v651_v33 }
 0x146   : > { %v659_v35 = vadd.f32 %v1648_v32, %v655_v34 }
 0x148   : > { %660 = vst.msk [vmem:[#allocation2] sm:$0xff] %vm622_vm0, %v659_v35 }
 0x149 PF: > { %v1547_v36 = vld [vmem:[%s1998_s28 + $0x8] sm:$0xff]  ;;  %v1546_v37 = vld [vmem:[%s1998_s28] sm:$0xff]  ;;  %vm700_vm6 = vcmask 261120   ;;  %s2276_s14 = scalar_lea.vmem %s2223_s6, %s1975_s19  ;;  %s1813_s28 = smov 88   ;;  %vm727_vm7 = vcmask 64512   ;;  %vm764_vm8 = vcmask 1043456  }
 0x14a   : > { %710 = vmatpush.bf16.msra.mxu0 %v1547_v36  ;;  %v1654_v40 = vld [vmem:[%s2276_s14] ss:$0 sm:$0xff]  ;;  %s1814_s30 = smov 96   ;;  %s1815_s0 = smov 120   ;;  %v2074_v59 = vld [vmem:[#allocation3] sm:$0xff]  ;;  %vm1147_vm13 = vcmask 523264  }
 0x14b   : > { %s1816_s1 = smov 80   ;;  %s1817_s26 = smov 72   ;;  %v718_v52 = vld [vmem:[%s2003_s27] sm:$0xf]  ;;  %v719_v33 = vld [vmem:[%s2003_s27 + $0x4] sm:$0xf] }
 0x14c   : > { %s1818_s29 = smov 112   ;;  %v862_v55 = vsel %vm764_vm8, %v718_v52, 0  ;;  %s1819_s18 = smov 56   ;;  %v843_v34 = vsel %vm764_vm8, %v719_v33, 0 }
 0x14d   : > { %s1820_s17 = smov 40   ;;  %s1821_s24 = smov 64  }
 0x14e   : > { %711 = vmatpush.bf16.msra.mxu0 %v1546_v37  ;;  %s1822_s21 = smov 104   ;;  %s1823_s22 = smov 48  }
 0x14f   : > { %v2047_v38 = vld [vmem:[#allocation2] sm:$0xff]  ;;  %s2277_s19 = sld [smem:[#allocation13_spill]] }
 0x150   : > { %v679_v39 = vpack.c.bf16 %v2047_v38, %v2047_v38 }
 0x152   : > { %1498 = vmatmul.msk.bf16.vlgmr.msra.gmra.mxu0 %vm700_vm6, %v679_v39 }
 0x153   : > { %852 = vmatpush.bf16.msrb.mxu0 %v843_v34 }
 0x155   : > { %p1537_p1 = scmp.ne.s32.totalorder %s2277_s19, 1 }
 0x1cf   : > { %v713_v41 = vpop.f32.mrf.mxu0 }
 0x1d0   : > { %v714_v42 = vadd.f32 %v1654_v40, %v713_v41 }
 0x1d2   : > { %v717_v43 = vpack.c.bf16 %v714_v42, %v714_v42 }
 0x1d4   : > { %v723_v44 = vunpack.c.l.b16 %v717_v43 }
 0x1d6   : > { %v2057_v45 = vpack.c.b16 %v723_v44, %v723_v44 }
 0x1d7   : > { %v715_v46 = vpop.f32.mrf.mxu0 }
 0x1d8   : > { %784 = vrot.lane.b32.xlu2 %v2057_v45, %s1813_s28  ;;  %725 = vrot.lane.b32.xlu0 %v2057_v45, %s1814_s30 }
 0x1e0   : > { %782 = vrot.lane.b32.xlu2 %v2057_v45, %s1815_s0 }
 0x1e8   : > { %879 = vrot.lane.b32.xlu2 %v2057_v45, %s1816_s1 }
 0x1f0   : > { %956 = vrot.lane.b32.xlu2 %v2057_v45, %s1817_s26 }
 0x1f8   : > { %877 = vrot.lane.b32.xlu2 %v2057_v45, %s1818_s29 }
 0x232   : > { %v785_v47 = vpop.permute.xlu2 %784 }
 0x233   : > { %v790_v48 = vsel %vm727_vm7, %v785_v47, 0 }
 0x234   : > { %799 = vmatpush.bf16.xpose.msra.mxu3 %v790_v48 }
 0x23a   : > { %v783_v49 = vpop.permute.xlu2 %782 }
 0x23b   : > { %1501 = vmatmul.msk.bf16.vlgmr.msra.gmra.mxu3 %vm727_vm7, %v783_v49 }
 0x242   : > { %v880_v50 = vpop.permute.xlu2 %879 }
 0x243   : > { %v885_v51 = vsel %vm727_vm7, %v880_v50, 0 }
 0x244   : > { %894 = vmatpush.bf16.xpose.msrb.mxu3 %v885_v51 }
 0x24a   : > { %v957_v53 = vpop.permute.xlu2 %956  ;;  %v726_v54 = vpop.permute.xlu0 %725 }
 0x24b   : > { %v732_v56 = vsel %vm727_vm7, %v726_v54, 0  ;;  %v962_v58 = vsel %vm727_vm7, %v957_v53, 0 }
 0x24c   : > { %741 = vmatpush.bf16.xpose.msra.mxu1 %v732_v56 }
 0x252   : > { %v878_v57 = vpop.permute.xlu2 %877 }
 0x253   : > { %1499 = vmatmul.msk.bf16.vlgmr.msra.gmra.mxu1 %vm727_vm7, %v717_v43  ;;  %1505 = vmatmul.msk.bf16.vlgmr.msrb.gmra.mxu3 %vm727_vm7, %v878_v57 }
 0x254   : > { %871 = vmatpush.bf16.msrb.mxu1 %v862_v55 }
 0x258   : > { %971 = vmatpush.bf16.xpose.msra.mxu1 %v962_v58 }
 0x2be   : > { %v801_v60 = vpop.f32.mrf.mxu3 }
 0x2bf   : > { %v802_v61 = vadd.f32 %v801_v60, %v2074_v59 }
 0x2c1   : > { %v805_v62 = vsel %vm727_vm7, %v802_v61, -inf }
 0x2c2   : > { %806 = vmax.xlane.f32.xlu2 %v805_v62 }
 0x2c6   : > { %v803_v63 = vpop.f32.mrf.mxu3 }
 0x2d0   : > { %v743_v0 = vpop.f32.mrf.mxu1 }
 0x2d1   : > { %v744_v1 = vadd.f32 %v743_v0, %v2074_v59 }
 0x2d3   : > { %v747_v2 = vsel %vm727_vm7, %v744_v1, -inf }
 0x2d4   : > { %748 = vmax.xlane.f32.xlu0 %v747_v2 }
 0x2d6   : > { %v896_v3 = vpop.f32.mrf.mxu3 }
 0x2d7   : > { %v2081_v4 = vadd.f32 %v896_v3, %v2074_v59 }
 0x2d8   : > { %v745_v5 = vpop.f32.mrf.mxu1 }
 0x2d9   : > { %v900_v6 = vsel %vm727_vm7, %v2081_v4, -inf }
 0x2dc   : > { %901 = vmax.xlane.f32.xlu0 %v900_v6 }
 0x2de   : > { %v898_v7 = vpop.f32.mrf.mxu3 }
 0x335   : > { %v807_v8 = vpop.xlane.xlu2 %806 }
 0x336   : > { %v808_v9 = vsub.f32 %v802_v61, %v807_v8 }
 0x338   : > { %v809_v10 = vmul.f32 1.442695, %v808_v9 }
 0x33a   : > { %1656 = vpow2.f32 %v809_v10 }
 0x340   : > { %v1657_v11 = vpop.eup %1656 }
 0x341   : > { %v811_v12 = vsel %vm727_vm7, %v1657_v11, 0.0 }
 0x342   : > { %812 = vadd.xlane.f32.xlu0 %v811_v12 }
 0x347   : > { %v749_v13 = vpop.xlane.xlu0 %748 }
 0x348   : > { %v750_v14 = vsub.f32 %v744_v1, %v749_v13  ;;  %v721_v1 = vld [vmem:[%s2003_s27 + $0xc] sm:$0xf] }
 0x349   : > { %v1015_v6 = vsel %vm764_vm8, %v721_v1, 0 }
 0x34a   : > { %v751_v15 = vmul.f32 1.442695, %v750_v14 }
 0x34c   : > { %1658 = vpow2.f32 %v751_v15 }
 0x34f   : > { %v902_v18 = vpop.xlane.xlu0 %901 }
 0x350   : > { %v903_v46 = vsub.f32 %v2081_v4, %v902_v18  ;;  %v2117_v18 = vld [vmem:[%s2024_s23] sm:$0x3f] }
 0x352   : > { %v1659_v16 = vpop.eup %1658  ;;  %v904_v47 = vmul.f32 1.442695, %v903_v46 }
 0x353   : > { %v753_v17 = vsel %vm727_vm7, %v1659_v16, 0.0 }
 0x354   : > { %754 = vadd.xlane.f32.xlu1 %v753_v17 }
 0x356   : > { %817 = vrot.lane.b32.xlu0 %v2057_v45, %s1819_s18 }
 0x35e   : > { %989 = vrot.lane.b32.xlu0 %v2057_v45, %s1820_s17 }
 0x36d   : > { %759 = vrot.lane.b32.xlu1 %v2057_v45, %s1821_s24 }
 0x375   : > { %954 = vrot.lane.b32.xlu1 %v2057_v45, %s1822_s21 }
 0x3b5   : > { %v813_v19 = vpop.xlane.xlu0 %812 }
 0x3c7   : > { %v755_v23 = vpop.xlane.xlu1 %754 }
 0x3c8   : > { %v818_v20 = vpop.permute.xlu0 %817  ;;  %1660 = vrcp.f32 %v755_v23 }
 0x3c9   : > { %v823_v28 = vsel %vm764_vm8, %v818_v20, 0  ;;  %1662 = vrcp.f32 %v813_v19  ;;  %v1031_v20 = vperm.slane %v2117_v18, 0 }
 0x3ca   : > { %1664 = vpow2.f32 %v904_v47 }
 0x3ce   : > { %v1661_v24 = vpop.eup %1660 }
 0x3cf   : > { %v757_v25 = vmul.f32 %v1661_v24, %v1659_v16  ;;  %v1663_v30 = vpop.eup %1662 }
 0x3d0   : > { %v990_v21 = vpop.permute.xlu0 %989  ;;  %v815_v31 = vmul.f32 %v1663_v30, %v1657_v11  ;;  %v1665_v53 = vpop.eup %1664 }
 0x3d1   : > { %v995_v22 = vsel %vm764_vm8, %v990_v21, 0  ;;  %v758_v29 = vpack.c.bf16 %v757_v25, %v757_v25  ;;  %v906_v56 = vsel %vm727_vm7, %v1665_v53, 0.0 }
 0x3d2   : > { %1004 = vmatpush.bf16.msra.mxu3 %v995_v22  ;;  %v816_v32 = vpack.c.bf16 %v815_v31, %v815_v31 }
 0x3df   : > { %v760_v26 = vpop.permute.xlu1 %759 }
 0x3e0   : > { %v766_v27 = vsel %vm764_vm8, %v760_v26, 0 }
 0x3e1   : > { %775 = vmatpush.bf16.msra.mxu2 %v766_v27 }
 0x3e4   : > { %1500 = vmatmul.msk.bf16.vlgmr.msra.gmra.mxu2 %vm727_vm7, %v758_v29 }
 0x3e5   : > { %832 = vmatpush.bf16.msrb.mxu2 %v823_v28  ;;  %v1824_v28 = vmov 32.0  }
 0x3e7   : > { %v955_v41 = vpop.permute.xlu1 %954 }
 0x3f4   : > { %1502 = vmatmul.msk.bf16.vlgmr.msrb.gmra.mxu2 %vm727_vm7, %v816_v32 }
 0x467   : > { %v777_v35 = vpop.f32.mrf.mxu2 }
 0x468   : > { %v781_v36 = vpack.c.bf16 %v777_v35, %v777_v35 }
 0x46a   : > { %1504 = vmatmul.msk.bf16.vlgmr.msrb.gmra.mxu1 %vm727_vm7, %v781_v36 }
 0x46f   : > { %v779_v37 = vpop.f32.mrf.mxu2 }
 0x477   : > { %v834_v39 = vpop.f32.mrf.mxu2 }
 0x478   : > { %v838_v40 = vpack.c.bf16 %v834_v39, %v834_v39 }
 0x47a   : > { %1503 = vmatmul.msk.bf16.vlgmr.msrb.gmra.mxu0 %vm727_vm7, %v838_v40  ;;  %1508 = vmatmul.msk.bf16.vlgmr.msra.gmra.mxu1 %vm727_vm7, %v955_v41  ;;  %v1549_v40 = vld [vmem:[%s2008_s25 + $0x8] sm:$0xff]  ;;  %v1548_v41 = vld [vmem:[%s2008_s25] sm:$0xff] }
 0x47f   : > { %v836_v42 = vpop.f32.mrf.mxu2 }
 0x4e7   : > { %v873_v43 = vpop.f32.mrf.mxu1 }
 0x4ef   : > { %v875_v44 = vpop.f32.mrf.mxu1 }
 0x4f7   : > { %v854_v48 = vpop.f32.mrf.mxu0  ;;  %v973_v49 = vpop.f32.mrf.mxu1 }
 0x4f8   : > { %v874_v50 = vadd.f32 %v873_v43, %v854_v48  ;;  %v974_v51 = vadd.f32 %v973_v49, %v2074_v59 }
 0x4fa   : > { %v977_v52 = vsel %vm727_vm7, %v974_v51, -inf }
 0x4fb   : > { %978 = vmax.xlane.f32.xlu1 %v977_v52  ;;  %v1063_v52 = vperm.slane %v2117_v18, 1 }
 0x4ff   : > { %v856_v54 = vpop.f32.mrf.mxu0  ;;  %v975_v55 = vpop.f32.mrf.mxu1 }
 0x500   : > { %v1065_v54 = vperm.slane %v2117_v18, 2 }
 0x503   : > { %907 = vadd.xlane.f32.xlu1 %v906_v56 }
 0x56e   : > { %v979_v57 = vpop.xlane.xlu1 %978 }
 0x56f   : > { %v980_v58 = vsub.f32 %v974_v51, %v979_v57 }
 0x571   : > { %v981_v60 = vmul.f32 1.442695, %v980_v58 }
 0x573   : > { %1666 = vpow2.f32 %v981_v60  ;;  %v1553_v60 = vld [vmem:[%s2019_s4 + $0x18] sm:$0xff] }
 0x574   : > { %1155 = vmatpush.bf16.msrb.mxu1 %v1553_v60 }
 0x576   : > { %v908_v59 = vpop.xlane.xlu1 %907 }
 0x577   : > { %1668 = vrcp.f32 %v908_v59  ;;  %v1550_v59 = vld [vmem:[%s2019_s4] sm:$0xff] }
 0x579   : > { %v1667_v61 = vpop.eup %1666 }
 0x57a   : > { %v983_v62 = vsel %vm727_vm7, %v1667_v61, 0.0 }
 0x57b   : > { %984 = vadd.xlane.f32.xlu2 %v983_v62  ;;  %v1551_v62 = vld [vmem:[%s2019_s4 + $0x8] sm:$0xff] }
 0x57d   : > { %v1669_v0 = vpop.eup %1668 }
 0x57e   : > { %v910_v3 = vmul.f32 %v1669_v0, %v1665_v53 }
 0x580   : > { %v911_v9 = vpack.c.bf16 %v910_v3, %v910_v3 }
 0x593   : > { %912 = vrot.lane.b32.xlu2 %v2057_v45, %s1823_s22  ;;  %v720_v45 = vld [vmem:[%s2003_s27 + $0x8] sm:$0xf] }
 0x594   : > { %v938_v10 = vsel %vm764_vm8, %v720_v45, 0 }
 0x595   : > { %947 = vmatpush.bf16.msra.mxu0 %v938_v10 }
 0x599   : > { %1097 = vmatpush.bf16.msrb.mxu0 %v1549_v40 }
 0x59d   : > { %1098 = vmatpush.bf16.msrb.mxu0 %v1548_v41 }
 0x5ee   : > { %v985_v63 = vpop.xlane.xlu2 %984 }
 0x5ef   : > { %1670 = vrcp.f32 %v985_v63  ;;  %v1655_v63 = vld [vmem:[%s604_s12] ss:$0 sm:$0xff] }
 0x5f0   : > { %1672 = vrcp.f32 %v1824_v28 }
 0x5f5   : > { %v1671_v2 = vpop.eup %1670 }
 0x5f6   : > { %v987_v4 = vmul.f32 %v1671_v2, %v1667_v61  ;;  %v913_v5 = vpop.permute.xlu2 %912  ;;  %v1673_v29 = vpop.eup %1672  ;;  %v1552_v61 = vld [vmem:[%s2019_s4 + $0x10] sm:$0xff] }
 0x5f7   : > { %v918_v7 = vsel %vm764_vm8, %v913_v5, 0  ;;  %v1038_v30 = vmul.f32 32.0, %v1673_v29  ;;  %vm1042_vm9 = vweird.f32 %v1673_v29  ;;  %1156 = vmatpush.bf16.msrb.mxu1 %v1552_v61 }
 0x5f8   : > { %v988_v8 = vpack.c.bf16 %v987_v4, %v987_v4  ;;  %927 = vmatpush.bf16.msra.mxu2 %v918_v7 }
 0x5f9   : > { %v1039_v31 = vsub.f32 1.0, %v1038_v30 }
 0x5fa   : > { %1509 = vmatmul.msk.bf16.vlgmr.msra.gmra.mxu3 %vm727_vm7, %v988_v8 }
 0x5fb   : > { %1506 = vmatmul.msk.bf16.vlgmr.msra.gmra.mxu2 %vm727_vm7, %v911_v9  ;;  %v1040_v32 = vmul.f32 %v1673_v29, %v1039_v31  ;;  %1157 = vmatpush.bf16.msrb.mxu1 %v1551_v62 }
 0x5fc   : > { %1024 = vmatpush.bf16.msrb.mxu2 %v1015_v6 }
 0x5fd   : > { %v1041_v33 = vadd.f32 %v1673_v29, %v1040_v32 }
 0x5ff   : > { %v2122_v34 = vsel %vm1042_vm9, %v1673_v29, %v1041_v33  ;;  %1158 = vmatpush.bf16.msrb.mxu1 %v1550_v59  ;;  %v1187_v33 = vperm.slane %v2117_v18, 4 }
 0x67d   : > { %v1006_v11 = vpop.f32.mrf.mxu3 }
 0x67e   : > { %v1010_v12 = vpack.c.bf16 %v1006_v11, %v1006_v11  ;;  %v929_v13 = vpop.f32.mrf.mxu2 }
 0x67f   : > { %v933_v14 = vpack.c.bf16 %v929_v13, %v929_v13 }
 0x680   : > { %1510 = vmatmul.msk.bf16.vlgmr.msrb.gmra.mxu2 %vm727_vm7, %v1010_v12  ;;  %v1122_v12 = vperm.slane %v2117_v18, 3 }
 0x681   : > { %1507 = vmatmul.msk.bf16.vlgmr.msra.gmra.mxu0 %vm727_vm7, %v933_v14 }
 0x685   : > { %v1008_v15 = vpop.f32.mrf.mxu3 }
 0x686   : > { %v931_v16 = vpop.f32.mrf.mxu2 }
 0x6fe   : > { %v949_v17 = vpop.f32.mrf.mxu0 }
 0x6ff   : > { %v953_v19 = vadd.f32 %v949_v17, %v874_v50 }
 0x703   : > { %v1026_v21 = vpop.f32.mrf.mxu2 }
 0x704   : > { %v1030_v22 = vadd.f32 %v1026_v21, %v953_v19 }
 0x706   : > { %v1032_v23 = vadd.f32 %v1031_v20, %v1030_v22  ;;  %v951_v24 = vpop.f32.mrf.mxu0 }
 0x708   : > { %v1033_v25 = vadd.f32 %v1032_v23, %v2047_v38 }
 0x70a   : > { %v1034_v26 = vsel %vm700_vm6, %v1033_v25, 0.0 }
 0x70b   : > { %1035 = vadd.xlane.f32.xlu1 %v1034_v26  ;;  %v1028_v27 = vpop.f32.mrf.mxu2 }
 0x77e   : > { %v1036_v35 = vpop.xlane.xlu1 %1035 }
 0x77f   : > { %v1044_v36 = vmul.f32 %v2122_v34, %v1036_v35 }
 0x781   : > { %v1045_v38 = vsub.f32 %v1033_v25, %v1044_v36  ;;  %v1189_v36 = vperm.slane %v2117_v18, 5 }
 0x783   : > { %v1046_v37 = vmul.f32 %v1045_v38, %v1045_v38 }
 0x785   : > { %v1047_v39 = vsel %vm700_vm6, %v1046_v37, 0.0 }
 0x786   : > { %1048 = vadd.xlane.f32.xlu0 %v1047_v39 }
 0x7f9   : > { %v1049_v42 = vpop.xlane.xlu0 %1048 }
 0x7fa   : > { %v1050_v43 = vmul.f32 %v1049_v42, %v2122_v34 }
 0x7fc   : > { %v1051_v44 = vadd.f32 1e-05, %v1050_v43 }
 0x7fe   : > { %1674 = vrsqrt.f32 %v1051_v44  ;;  %vm1058_vm11 = vweird.f32 %v1051_v44 }
 0x804   : > { %v1675_v46 = vpop.eup %1674 }
 0x805   : > { %v1053_v47 = vmul.f32 %v1675_v46, %v1051_v44  ;;  %vm1059_vm10 = vweird.f32 %v1675_v46 }
 0x806   : > { %vm1060_vm12 = vmor %vm1058_vm11, %vm1059_vm10 }
 0x807   : > { %v1054_v48 = vmul.f32 %v1675_v46, %v1053_v47 }
 0x809   : > { %v1055_v49 = vmul.f32 0.5, %v1054_v48 }
 0x80b   : > { %v1056_v50 = vsub.f32 1.5, %v1055_v49 }
 0x80d   : > { %v1057_v51 = vmul.f32 %v1675_v46, %v1056_v50 }
 0x80f   : > { %v1061_v53 = vsel %vm1060_vm12, %v1675_v46, %v1057_v51 }
 0x810   : > { %v1062_v55 = vmul.f32 %v1061_v53, %v1045_v38 }
 0x812   : > { %v1064_v56 = vmul.f32 %v1063_v52, %v1062_v55 }
 0x814   : > { %v1066_v57 = vadd.f32 %v1065_v54, %v1064_v56 }
 0x816   : > { %v1067_v58 = vpack.c.bf16 %v1066_v57, %v1066_v57 }
 0x818   : > { %1519 = vmatmul.msk.bf16.vlgmr.msrb.gmra.mxu0 %vm700_vm6, %v1067_v58 }
 0x895   : > { %v1100_v0 = vpop.f32.mrf.mxu0 }
 0x896   : > { %v1101_v1 = vadd.f32 %v1655_v63, %v1100_v0 }
 0x898   : > { %v1104_v2 = vmul.f32 %v1101_v1, %v1101_v1 }
 0x89a   : > { %v1105_v3 = vmul.f32 %v1104_v2, %v1101_v1 }
 0x89c   : > { %v1106_v4 = vmul.f32 0.044715, %v1105_v3 }
 0x89d   : > { %v1102_v5 = vpop.f32.mrf.mxu0 }
 0x89e   : > { %v1107_v6 = vadd.f32 %v1106_v4, %v1101_v1 }
 0x8a0   : > { %v1108_v7 = vmul.f32 0.7978846, %v1107_v6 }
 0x8a2   : > { %1676 = vtanh.f32 %v1108_v7 }
 0x8a8   : > { %v1677_v8 = vpop.eup %1676 }
 0x8a9   : > { %v1110_v9 = vadd.f32 1.0, %v1677_v8 }
 0x8ab   : > { %v1111_v45 = vmul.f32 0.5, %v1110_v9 }
 0x8ad   : > { %v1112_v10 = vmul.f32 %v1111_v45, %v1101_v1 }
 0x8af   : > { %v1113_v11 = vpack.c.bf16 %v1112_v10, %v1112_v10 }
 0x8b1   : > { %1536 = vmatmul.msk.bf16.vlgmr.msrb.gmra.mxu1 %vm1147_vm13, %v1113_v11 }
 0x92e   : > { %v1160_v13 = vpop.f32.mrf.mxu1 }
 0x92f   : > { %v1161_v14 = vadd.f32 %v1160_v13, %v1122_v12 }
 0x931   : > { %v1164_v15 = vadd.f32 %v1161_v14, %v1066_v57 }
 0x933   : > { %v1165_v16 = vsel %vm700_vm6, %v1164_v15, 0.0 }
 0x934   : > { %1166 = vadd.xlane.f32.xlu1 %v1165_v16 }
 0x936   : > { %v1162_v17 = vpop.f32.mrf.mxu1 }
 0x9a7   : > { %v1167_v19 = vpop.xlane.xlu1 %1166 }
 0x9a8   : > { %v1168_v20 = vmul.f32 %v1167_v19, %v2122_v34 }
 0x9aa   : > { %v1169_v21 = vsub.f32 %v1164_v15, %v1168_v20 }
 0x9ac   : > { %v1170_v22 = vmul.f32 %v1169_v21, %v1169_v21 }
 0x9ae   : > { %v1171_v23 = vsel %vm700_vm6, %v1170_v22, 0.0 }
 0x9af   : > { %1172 = vadd.xlane.f32.xlu1 %v1171_v23 }
 0xa22   : > { %v1173_v24 = vpop.xlane.xlu1 %1172 }
 0xa23   : > { %v1174_v25 = vmul.f32 %v1173_v24, %v2122_v34 }
 0xa25   : > { %v1175_v26 = vadd.f32 1e-05, %v1174_v25 }
 0xa27   : > { %1678 = vrsqrt.f32 %v1175_v26  ;;  %vm1182_vm15 = vweird.f32 %v1175_v26 }
 0xa2d   : > { %v1679_v27 = vpop.eup %1678 }
 0xa2e   : > { %v1177_v28 = vmul.f32 %v1679_v27, %v1175_v26  ;;  %vm1183_vm14 = vweird.f32 %v1679_v27 }
 0xa2f   : > { %vm1184_vm0 = vmor %vm1182_vm15, %vm1183_vm14 }
 0xa30   : > { %v1178_v29 = vmul.f32 %v1679_v27, %v1177_v28 }
 0xa32   : > { %v1179_v30 = vmul.f32 0.5, %v1178_v29 }
 0xa34   : > { %v1180_v31 = vsub.f32 1.5, %v1179_v30 }
 0xa36   : > { %v1181_v32 = vmul.f32 %v1679_v27, %v1180_v31 }
 0xa38   : > { %v1185_v35 = vsel %vm1184_vm0, %v1679_v27, %v1181_v32 }
 0xa39   : > { %v1186_v38 = vmul.f32 %v1185_v35, %v1169_v21 }
 0xa3b   : > { %v1188_v37 = vmul.f32 %v1187_v33, %v1186_v38  ;;  %1195 = sbr.rel (%p1537_p1) target bundleno = 2781 (0xadd), region = 76 }
 0xa3d   : > { %v1190_v39 = vadd.f32 %v1189_v36, %v1188_v37 }
 0xa3f   : > { %1191 = vst.msk [vmem:[#allocation2] sm:$0xff] %vm700_vm6, %v1190_v39 }
 0xa40   : > { %v1197_v34 = vld [vmem:[%s1988_s15] sm:$0xff]  ;;  %vm1211_vm1 = vcmask 7168   ;;  %1196 = vst.msk [vmem:[%s2026_s5] sm:$0xff] %vm700_vm6, %v1190_v39  ;;  %v1825_v40 = vmov 0   ;;  %vm1240_vm7 = vcmask 253952  }
 0xa41   : > { %1680 = vset.pattern.permute.xlu0 %v1825_v40  ;;  %v1212_v41 = vsel %vm1211_vm1, %v1197_v34, 0.0 }
 0xa42   : > { %v1213_v42 = vrot.slane %v1212_v41, 4 }
 0xa44   : > { %v1214_v43 = vadd.f32 %v1213_v42, %v1212_v41 }
 0xa46   : > { %v1215_v18 = vrot.slane %v1214_v43, 2 }
 0xa48   : > { %v1216_v44 = vadd.f32 %v1215_v18, %v1214_v43 }
 0xa4a   : > { %v1217_v46 = vrot.slane %v1216_v44, 1 }
 0xa4c   : > { %v1218_v47 = vadd.f32 %v1217_v46, %v1216_v44 }
 0xa4e   : > { %v1219_v48 = vmax.f32 %v1218_v47, 1.0 }
 0xa50   : > { %1222 = vperm.xlu0 %1680, %v1219_v48  }
 0xa58   : > { %1200 = vperm.xlu0 %1680, %v1197_v34  }
 0xac2   : > { %v1223_v49 = vpop.permute.xlu0 %1222 }
 0xac3   : > { %1681 = vrcp.f32 %v1223_v49  ;;  %v1236_v62 = vand.u32 2147483648, %v1223_v49  ;;  %vm1230_vm3 = vweird.f32 %v1223_v49  ;;  %v1234_v59 = vand.u32 2147483647, %v1223_v49 }
 0xac5   : > { %v1237_v2 = vor.u32 1.1754944e-38, %v1236_v62  ;;  %vm1235_vm5 = vcmp.eq.f32.partialorder %v1234_v59, 8.507059e+37 }
 0xac9   : > { %v1682_v50 = vpop.eup %1681 }
 0xaca   : > { %v1226_v51 = vmul.f32 %v1682_v50, %v1223_v49  ;;  %v1201_v52 = vpop.permute.xlu0 %1200  ;;  %vm1231_vm2 = vweird.f32 %v1682_v50 }
 0xacb   : > { %v1203_v53 = vmul.f32 %v1201_v52, %v1190_v39  ;;  %vm1232_vm4 = vmor %vm1230_vm3, %vm1231_vm2 }
 0xacc   : > { %v1227_v54 = vsub.f32 1.0, %v1226_v51 }
 0xacd   : > { %v1204_v55 = vsel %vm700_vm6, %v1203_v53, 0.0 }
 0xace   : > { %v1228_v56 = vmul.f32 %v1682_v50, %v1227_v54  ;;  %v1205_v57 = vrot.slane %v1204_v55, 4 }
 0xad0   : > { %v1206_v58 = vadd.f32 %v1205_v57, %v1204_v55  ;;  %v1229_v60 = vadd.f32 %v1682_v50, %v1228_v56 }
 0xad2   : > { %v1207_v61 = vrot.slane %v1206_v58, 2  ;;  %v1233_v0 = vsel %vm1232_vm4, %v1682_v50, %v1229_v60 }
 0xad3   : > { %v1238_v4 = vsel %vm1235_vm5, %v1237_v2, %v1233_v0 }
 0xad4   : > { %v1208_v63 = vadd.f32 %v1207_v61, %v1206_v58 }
 0xad6   : > { %v1209_v1 = vrot.slane %v1208_v63, 1 }
 0xad8   : > { %v1210_v3 = vadd.f32 %v1209_v1, %v1208_v63 }
 0xada   : > { %v1239_v5 = vmul.f32 %v1238_v4, %v1210_v3 }
 0xadc   : > { %1241 = vst.msk [vmem:[%s572_s13] sm:$0x1] %vm1240_vm7, %v1239_v5 }
 0xadd PF: > { %s2278_s15 = sld [smem:[#allocation14_spill]]  ;;  %s1259_s28 = sshll.u32 %s2026_s5, 4  ;;  %s1260_s28 = int_to_ptr.vmem [resolvable:$true] %s1259_s28 }
 0xade   : > { %s2280_s3 = sld [smem:[#allocation28_spill]]  ;;  %s1243_s0 = scalar_lea.sflag [#allocation5], %s1966_s16 }
 0xae3   : > { %s1539_s4 = sshll.u32 %s2278_s15, 3 }
 0xae4   : > { %s1257_s14 = scalar_lea.hbm %s2280_s3, %s1539_s4  ;;  %s1703_s17 = scalar_lea.hbm %s2280_s3, 16 }
 0xae5   : > { %s1261_s30 = sshll.u32 %s1257_s14, 4  ;;  %s1262_s30 = int_to_ptr.hbm [resolvable:$true] %s1261_s30 }
 0xae6   : > { %s1697_s1 = sshra.s32 %s1262_s30, 4  ;;  %s1698_s1 = int_to_ptr.hbm [resolvable:$true] %s1697_s1 }
 0xae7   : > { %s1699_s26 = scalar_lea.hbm %s1698_s1, 8  ;;  %p1704_p6 = scmp.lt.s32.totalorder %s1698_s1, %s2280_s3 }
 0xae8   : > { %p1700_p2 = scmp.ne.s32.totalorder %s1698_s1, %s1699_s26  ;;  %p1705_p7 = scmp.lt.s32.totalorder %s1703_s17, %s1699_s26 }
 0xaea   : > { %p1701_p4 = pnand %p1700_p2, %p1945_p3  ;;  %p1706_p8 = por %p1705_p7, %p1704_p6 }
 0xaec   : > { %p1702_p5 = pneg %p1701_p4 }
 0xaee   : > { %p1707_p10 = pnand %p1706_p8, %p1702_p5 }
 0xaf0   : > { %1710 = shalt.err (!%p1707_p10)
}
 0xaf1   : > { %1554 = dma.vmem_to_hbm [thread:$0]  (%p1945_p3), %s1260_s28, 128, %s1262_s30, %s1243_s0  }
 0xaf2   : > { %s2281_s27 = sld [smem:[#allocation29_spill]]  ;;  %s1272_s4 = sshll.u32 %s572_s13, 4  ;;  %s1273_s4 = int_to_ptr.vmem [resolvable:$true] %s1272_s4 }
 0xaf3   : > { %s1248_s20 = scalar_lea.sflag [#allocation7], %s1966_s16 }
 0xaf8   : > { %s2282_s19 = smov %s2281_s27  ;;  %s1270_s25 = scalar_lea.hbm %s2281_s27, %s2278_s15 }
 0xaf9   : > { %s1274_s23 = sshll.u32 %s1270_s25, 4  ;;  %s1731_s28 = scalar_lea.hbm %s2282_s19, 2  ;;  %s1275_s23 = int_to_ptr.hbm [resolvable:$true] %s1274_s23 }
 0xafa   : > { %s1725_s14 = sshra.s32 %s1275_s23, 4  ;;  %s1726_s14 = int_to_ptr.hbm [resolvable:$true] %s1725_s14 }
 0xafb   : > { %s1727_s1 = scalar_lea.hbm %s1726_s14, 1  ;;  %p1732_p0 = scmp.lt.s32.totalorder %s1726_s14, %s2282_s19 }
 0xafc   : > { %p1728_p11 = scmp.ne.s32.totalorder %s1726_s14, %s1727_s1  ;;  %p1733_p1 = scmp.lt.s32.totalorder %s1731_s28, %s1727_s1 }
 0xafe   : > { %p1729_p12 = pnand %p1728_p11, %p1945_p3  ;;  %p1734_p2 = por %p1733_p1, %p1732_p0 }
 0xb00   : > { %p1730_p13 = pneg %p1729_p12 }
 0xb02   : > { %p1735_p4 = pnand %p1734_p2, %p1730_p13 }
 0xb04   : > { %1738 = shalt.err (!%p1735_p4)
}
 0xb05   : > { %1555 = dma.vmem_to_hbm [thread:$0]  (%p1945_p3), %s1273_s4, 16, %s1275_s23, %s1248_s20  }
 0xb06 PF: > { %s2283_s16 = sld [smem:[#allocation17_spill]] }
 0xb07   : > { %s2284_s13 = sld [smem:[#allocation10_spill]] }
 0xb0c   : > { %p1565_p5 = scmp.ge.s32.totalorder %s2283_s16, 2 }
 0xb0d   : > { %s1286_s18 = sand.u32 1, %s2284_s13  }
 0xb0e   : > { %p1559_p6 = pnand %p1565_p5, %p1955_p9  ;;  %s1287_s17 = scalar_lea.sflag [#allocation5], %s1286_s18 }
 0xb10   : > { %p1560_p7 = pneg %p1559_p6 }
 0xb12   : > { %1772 = dma.done.wait (%p1560_p7), %s1287_s17, 128  }
 0xb13   : > { %1774 = vsyncadd (%p1560_p7), %s1287_s17, 4294967168  ;;  %s1297_s24 = scalar_lea.sflag [#allocation7], %s1286_s18 }
 0xb14   : > { %1776 = dma.done.wait (%p1560_p7), %s1297_s24, 16  }
 0xb15   : > { %1778 = vsyncadd (%p1560_p7), %s1297_s24, 4294967280  ;;  %s30_s15 = sadd.s32 1, %s2283_s16   ;;  %s2286_s25 = sld [smem:[#allocation11_spill]] }
 0xb16   : > { %p27_p8 = scmp.ge.s32.totalorder %s30_s15, 6   ;;  %s2287_s26 = sld [smem:[#allocation12_spill]] }
 0xb17   : > { %s2288_s27 = sld [smem:[#allocation22_spill]] }
 0xb18   : > { %s2289_s28 = sld [smem:[#allocation15_spill]]  ;;  %29 = sbr.rel (!%p27_p8) target bundleno = 15 (0xf), region = 155 }
 0xb19   : > { %s2290_s29 = sld [smem:[#allocation16_spill]] }
 0xb1a   : > { %s2291_s30 = sld [smem:[#allocation18_spill]] }
 0xb1b   : > { %s2292_s14 = sld [smem:[#allocation20_spill]] }
 0xb1d   :  { %1302 = vsyncpa [#allocation5], 1 }
 0xb1e   :  { %1304 = vsyncpa [#allocation5 + $0x1], 1 }
 0xb1f   :  { %1305 = vsyncpa [#allocation7], 1 }
 0xb20   :  { %1307 = vsyncpa [#allocation7 + $0x1], 1 }

</bundles_post_ra>
